<compile_context>
chip_gen: v6e
topology: v6e:2x2x1
jax: 0.10.0
libtpu: 0.0.40
codegen_flags: <defaults>
</compile_context>

<pallas_src>
import numpy as np

import jax
import jax.numpy as jnp
from jax import lax
from jax.experimental import pallas as pl
from jax.experimental.pallas import tpu as pltpu


# ---------------------------------------------------------------------------
# Fused head kernel: one batch element per grid step
# ---------------------------------------------------------------------------
def _head_kernel(feat_ref, pw_ref, w0_ref, p_ref, lab_ref):
    """Fused avgpool7 + global-avgpool + Linear0 + ReLU + Linear1 + sigmoid.

    feat_ref : (1, C, HW) f32   backbone feature slice (NCHW reshape, HW on lanes)
    pw_ref   : (1, HW)    f32   pooling weights (AvgPool2d(7,1) o AdaptiveAvgPool2d(1))
    w0_ref   : (64, C)    bf16  Linear_layer0 weight (PyTorch layout)
    p_ref    : (64, 3)    f32   packed small params: [:,0]=b0, [:,1]=w1, [0,2]=b1
    lab_ref  : (1, 1, 1)  f32   sigmoid(logit) for this batch element
    """
    feat = feat_ref[0].astype(jnp.bfloat16)                              # (C, HW)

    # Linear0 applied before the spatial average (the two commute):
    # M=64, K=2048, N=HW on the MXU with f32 accumulation.
    t = jnp.dot(w0_ref[...], feat, preferred_element_type=jnp.float32)   # (64, HW)

    p = p_ref[...]                                                       # (64, 3)

    # Fold AvgPool2d(7,1) + global average: weighted lane reduce over HW.
    h = jnp.sum(t * pw_ref[...], axis=-1, keepdims=True) + p[:, 0:1]     # (64, 1)
    h = jnp.maximum(h, 0.0)                                              # ReLU

    # Linear(64, 1): VPU multiply + sublane reduce (no 1-column MXU matmul).
    y = jnp.sum(h * p[:, 1:2], axis=0, keepdims=True) + p[0:1, 2:3]      # (1, 1)

    # Sigmoid (exp goes to the EUP slot); everything here is f32.
    lab_ref[0] = 1.0 / (1.0 + jnp.exp(-y))


# ---------------------------------------------------------------------------
# Host-side pooling weights: AvgPool2d(7,1,0) composed with AdaptiveAvgPool2d(1)
# is a fixed weighted spatial average; weights are the per-pixel 7x7-window
# coverage counts normalized by 49 * (#windows).
# ---------------------------------------------------------------------------
def _pool_weights(H, W):
    assert H >= 7 and W >= 7, "AvgPool2d(kernel=7, stride=1, padding=0) needs H, W >= 7"
    oh, ow = H - 6, W - 6
    r = np.arange(H)
    c = np.arange(W)
    cr = np.minimum(oh - 1, r) - np.maximum(0, r - 6) + 1
    cc = np.minimum(ow - 1, c) - np.maximum(0, c - 6) + 1
    w = (cr[:, None] * cc[None, :]).astype(np.float64) / (49.0 * oh * ow)
    return w.reshape(1, H * W).astype(np.float32)                        # (1, HW)


# ---------------------------------------------------------------------------
# Wrapper: one fused pallas_call, grid over the batch
# ---------------------------------------------------------------------------
def classifier_head(feat_nchw, params):
    """Pallas-fused head of `Classifier`.

    feat_nchw : (B, 2048, H, W) backbone feature map `out1` (H, W >= 7), f32
    params    : (w0 (64,2048), b0 (64,), w1 (1,64), b1 (1,))  [PyTorch layouts]
    returns   : (classifier_labels (B, 1), out1)
    """
    w0, b0, w1, b1 = params
    B, C, H, W = feat_nchw.shape
    HW = H * W
    HID = w0.shape[0]  # 64

    feat3d = feat_nchw.reshape(B, C, HW)              # free reshape of contiguous NCHW
    pw = jnp.asarray(_pool_weights(H, W))             # (1, HW), trace-time constant
    w0_bf16 = w0.astype(jnp.bfloat16)                 # (HID, C) MXU operand
    b1col = jnp.zeros((HID, 1), jnp.float32).at[0, 0].set(b1.reshape(()))
    packed = jnp.concatenate(
        [b0.reshape(HID, 1).astype(jnp.float32),
         w1.reshape(HID, 1).astype(jnp.float32),
         b1col],
        axis=1)                                       # (HID, 3): b0 | w1 | b1

    labels3 = pl.pallas_call(
        _head_kernel,
        out_shape=jax.ShapeDtypeStruct((B, 1, 1), jnp.float32),
        grid=(B,),
        in_specs=[
            pl.BlockSpec((1, C, HW), lambda b: (b, 0, 0)),   # per-batch feature tile
            pl.BlockSpec((1, HW), lambda b: (0, 0)),         # shared, DMA'd once
            pl.BlockSpec((HID, C), lambda b: (0, 0)),        # shared, DMA'd once
            pl.BlockSpec((HID, 3), lambda b: (0, 0)),        # shared, DMA'd once
        ],
        out_specs=pl.BlockSpec((1, 1, 1), lambda b: (b, 0, 0)),
        compiler_params=pltpu.CompilerParams(
            dimension_semantics=("parallel",),               # v7x: shard batch over 2 TCs
            vmem_limit_bytes=32 * 1024 * 1024),
    )(feat3d, pw, w0_bf16, packed)

    # `out1` is returned unchanged by the PyTorch forward.
    return labels3.reshape(B, 1), feat_nchw


# ---------------------------------------------------------------------------
# Deterministic parameter init (PyTorch nn.Linear default uniform bounds)
# ---------------------------------------------------------------------------
def init_params(key):
    k0w, k0b, k1w, k1b = jax.random.split(key, 4)
    bound0 = 1.0 / (2048 ** 0.5)
    w0 = jax.random.uniform(k0w, (64, 2048), jnp.float32, -bound0, bound0)
    b0 = jax.random.uniform(k0b, (64,), jnp.float32, -bound0, bound0)
    bound1 = 1.0 / (64 ** 0.5)
    w1 = jax.random.uniform(k1w, (1, 64), jnp.float32, -bound1, bound1)
    b1 = jax.random.uniform(k1b, (1,), jnp.float32, -bound1, bound1)
    return (w0, b0, w1, b1)


# ---------------------------------------------------------------------------
# Pure-JAX reference of the head (independent pooling path) for verification
# ---------------------------------------------------------------------------
def _ref_head(feat, params):
    w0, b0, w1, b1 = params
    pooled = lax.reduce_window(feat, 0.0, lax.add,
                               window_dimensions=(1, 1, 7, 7),
                               window_strides=(1, 1, 1, 1),
                               padding="VALID") / 49.0               # AvgPool2d(7,1)
    g = jnp.mean(pooled, axis=(2, 3))                                # AdaptiveAvgPool2d(1) + flatten
    h = jnp.maximum(g @ w0.T + b0, 0.0)                              # Linear0 + ReLU
    y = h @ w1.T + b1                                                # Linear1
    return jax.nn.sigmoid(y)


if __name__ == "__main__":
    B, C, H, W = 2, 2048, 8, 8  # ResNet-50 feature map: C=2048 required; H, W >= 7
    key = jax.random.PRNGKey(0)
    kx, kp = jax.random.split(key)

    feat = jax.random.normal(kx, (B, C, H, W), jnp.float32)  # stands in for out1
    params = init_params(kp)

    head = jax.jit(classifier_head)
    labels, out1 = head(feat, params)
    labels = jax.block_until_ready(labels)
    out1 = jax.block_until_ready(out1)
    ref = jax.block_until_ready(_ref_head(feat, params))

    assert labels.shape == (B, 1)
    assert out1.shape == (B, C, H, W)
    assert bool(jnp.all((labels >= 0.0) & (labels <= 1.0)))
    # bf16 MXU inputs (f32 accumulation) -> relaxed tolerance vs f32 reference.
    assert jnp.allclose(labels, ref, atol=2e-2, rtol=2e-2), (
        float(jnp.max(jnp.abs(labels - ref))))
    assert jnp.array_equal(out1, feat)
    print("KERNEL_OK")
</pallas_src>

<mosaic_0001>
module attributes {stable_mosaic.version = 11 : i64} {
  func.func @_head_kernel(%arg0: i32, %arg1: memref<1x2048x64xf32, #tpu.memory_space<vmem>>, %arg2: memref<1x64xf32, #tpu.memory_space<vmem>>, %arg3: memref<64x2048xbf16, #tpu.memory_space<vmem>>, %arg4: memref<64x3xf32, #tpu.memory_space<vmem>>, %arg5: memref<1x1x1xf32, #tpu.memory_space<vmem>>) attributes {dimension_semantics = [#tpu.dimension_semantics<parallel>], iteration_bounds = array<i64: 2>, scalar_prefetch = 0 : i64, scratch_operands = 0 : i64, tpu.core_type = #tpu.core_type<tc>, window_params = [{transform_indices = @transform_0, window_bounds = array<i64: 1, 2048, 64>}, {pipeline_mode = #tpu.pipeline_mode<synchronous>, transform_indices = @transform_1, window_bounds = array<i64: 1, 64>}, {pipeline_mode = #tpu.pipeline_mode<synchronous>, transform_indices = @transform_2, window_bounds = array<i64: 64, 2048>}, {pipeline_mode = #tpu.pipeline_mode<synchronous>, transform_indices = @transform_3, window_bounds = array<i64: 64, 3>}, {transform_indices = @transform_4, window_bounds = array<i64: 1, 1, 1>}]} {
    %c0 = arith.constant 0 : index
    %c0_0 = arith.constant 0 : index
    %c0_1 = arith.constant 0 : index
    %0 = vector.load %arg1[%c0, %c0_0, %c0_1] : memref<1x2048x64xf32, #tpu.memory_space<vmem>>, vector<1x2048x64xf32>
    %1 = vector.shape_cast %0 : vector<1x2048x64xf32> to vector<2048x64xf32>
    %2 = arith.truncf %1 : vector<2048x64xf32> to vector<2048x64xbf16>
    %c0_2 = arith.constant 0 : index
    %c0_3 = arith.constant 0 : index
    %3 = vector.load %arg3[%c0_2, %c0_3] : memref<64x2048xbf16, #tpu.memory_space<vmem>>, vector<64x2048xbf16>
    %cst = arith.constant dense<0.000000e+00> : vector<64x64xf32>
    %4 = tpu.matmul %3, %2, %cst {dimension_numbers = #tpu.dot_dimension_numbers<[1], [0], [0], [1], [0, 0, 1, 1], [], []>} : vector<64x2048xbf16>, vector<2048x64xbf16>, vector<64x64xf32> -> vector<64x64xf32>
    %c0_4 = arith.constant 0 : index
    %c0_5 = arith.constant 0 : index
    %5 = vector.load %arg4[%c0_4, %c0_5] : memref<64x3xf32, #tpu.memory_space<vmem>>, vector<64x3xf32>
    %c0_6 = arith.constant 0 : index
    %c0_7 = arith.constant 0 : index
    %6 = vector.load %arg2[%c0_6, %c0_7] : memref<1x64xf32, #tpu.memory_space<vmem>>, vector<1x64xf32>
    %7 = vector.broadcast %6 : vector<1x64xf32> to vector<64x64xf32>
    %8 = arith.mulf %4, %7 : vector<64x64xf32>
    %cst_8 = arith.constant dense<0.000000e+00> : vector<64xf32>
    %9 = vector.multi_reduction <add>, %8, %cst_8 [1] : vector<64x64xf32> to vector<64xf32>
    %10 = vector.shape_cast %9 : vector<64xf32> to vector<64x1xf32>
    %11 = vector.extract_strided_slice %5 {offsets = [0, 0], sizes = [64, 1], strides = [1, 1]} : vector<64x3xf32> to vector<64x1xf32>
    %12 = arith.addf %10, %11 : vector<64x1xf32>
    %cst_9 = arith.constant 0.000000e+00 : f32
    %13 = vector.broadcast %cst_9 : f32 to vector<64x1xf32>
    %14 = arith.maximumf %12, %13 : vector<64x1xf32>
    %15 = vector.extract_strided_slice %5 {offsets = [0, 1], sizes = [64, 1], strides = [1, 1]} : vector<64x3xf32> to vector<64x1xf32>
    %16 = arith.mulf %14, %15 : vector<64x1xf32>
    %cst_10 = arith.constant dense<0.000000e+00> : vector<1xf32>
    %17 = vector.multi_reduction <add>, %16, %cst_10 [0] : vector<64x1xf32> to vector<1xf32>
    %18 = vector.shape_cast %17 : vector<1xf32> to vector<1x1xf32>
    %19 = vector.extract_strided_slice %5 {offsets = [0, 2], sizes = [1, 1], strides = [1, 1]} : vector<64x3xf32> to vector<1x1xf32>
    %20 = arith.addf %18, %19 : vector<1x1xf32>
    %cst_11 = arith.constant 0.000000e+00 : f32
    %21 = vector.broadcast %cst_11 : f32 to vector<1x1xf32>
    %22 = arith.subf %21, %20 : vector<1x1xf32>
    %23 = math.exp %22 : vector<1x1xf32>
    %cst_12 = arith.constant 1.000000e+00 : f32
    %24 = vector.broadcast %cst_12 : f32 to vector<1x1xf32>
    %25 = arith.addf %24, %23 : vector<1x1xf32>
    %cst_13 = arith.constant 1.000000e+00 : f32
    %26 = vector.broadcast %cst_13 : f32 to vector<1x1xf32>
    %27 = arith.divf %26, %25 : vector<1x1xf32>
    %c0_14 = arith.constant 0 : index
    %c0_15 = arith.constant 0 : index
    %c0_16 = arith.constant 0 : index
    %28 = vector.load %arg5[%c0_14, %c0_15, %c0_16] : memref<1x1x1xf32, #tpu.memory_space<vmem>>, vector<1x1x1xf32>
    %29 = vector.shape_cast %28 : vector<1x1x1xf32> to vector<1x1xf32>
    %30 = vector.shape_cast %27 : vector<1x1xf32> to vector<1x1x1xf32>
    tpu.vector_store %arg5[%c0_14, %c0_15, %c0_16], %30 {strides = array<i32>} : memref<1x1x1xf32, #tpu.memory_space<vmem>>, vector<1x1x1xf32>,
    return
  }
  func.func @transform_0(%arg0: i32) -> (i32, i32, i32) {
    %c0_i32 = arith.constant 0 : i32
    %c0_i32_0 = arith.constant 0 : i32
    %c0_i32_1 = arith.constant 0 : i32
    return %arg0, %c0_i32, %c0_i32_0 : i32, i32, i32
  }
  func.func @transform_1(%arg0: i32) -> (i32, i32) {
    %c0_i32 = arith.constant 0 : i32
    %c0_i32_0 = arith.constant 0 : i32
    %c0_i32_1 = arith.constant 0 : i32
    return %c0_i32, %c0_i32_0 : i32, i32
  }
  func.func @transform_2(%arg0: i32) -> (i32, i32) {
    %c0_i32 = arith.constant 0 : i32
    %c0_i32_0 = arith.constant 0 : i32
    %c0_i32_1 = arith.constant 0 : i32
    return %c0_i32, %c0_i32_0 : i32, i32
  }
  func.func @transform_3(%arg0: i32) -> (i32, i32) {
    %c0_i32 = arith.constant 0 : i32
    %c0_i32_0 = arith.constant 0 : i32
    %c0_i32_1 = arith.constant 0 : i32
    return %c0_i32, %c0_i32_0 : i32, i32
  }
  func.func @transform_4(%arg0: i32) -> (i32, i32, i32) {
    %c0_i32 = arith.constant 0 : i32
    %c0_i32_0 = arith.constant 0 : i32
    %c0_i32_1 = arith.constant 0 : i32
    return %arg0, %c0_i32, %c0_i32_0 : i32, i32, i32
  }
}

</mosaic_0001>

<bundles_post_ra>
// kernel: classifier_head.1
= control target key start
LH: loop header
LB: loop body
LE: loop exit
PB: predicated region body
PF: predicated region fallthrough
CT: control target
= control target key end

     0   :  { %s2112_s15 = smov 0   ;;  %s2958_s0 = inlined_call_operand.vmem [shape: f32[2,2048,64], index: 0, kind: input, shape index: {}]   ;;  %s2959_s1 = inlined_call_operand.vmem [shape: f32[1,64], index: 1, kind: input, shape index: {}]   ;;  %s2960_s2 = inlined_call_operand.vmem [shape: bf16[64,2048], index: 2, kind: input, shape index: {}]   ;;  %s2961_s3 = inlined_call_operand.vmem [shape: f32[64,3], index: 3, kind: input, shape index: {}]   ;;  %s2962_s4 = inlined_call_operand.vmem [shape: f32[2,1,1], index: 4, kind: output, shape index: {}]  }
   0x1 LB: > { %s1668_s16 = sadd.s32 4294967295, %s2083_s15   ;;  %p1672_p0 = scmp.ge.s32.totalorder %s2083_s15, 1  ;;  %s2083_s15 = sphi %s2112_s15, %s14_s15  }
   0x2   : > { %p162_p1 = scmp.lt.s32.totalorder %s2083_s15, 3 }
   0x4   : > { %p163_p2 = pnand %p1672_p0, %p162_p1 }
   0x6   : > { %166 = sbr.rel (%p163_p2) target bundleno = 576 (0x240), region = 36 }
   0xb   : > { %p186_p3 = scmp.lt.s32.totalorder %s1668_s16, 1  ;;  %v2123_v0 = vld [vmem:[%s2960_s2] sm:$0xff]  ;;  %v2133_v2 = vld [vmem:[%s2960_s2 + $0x8] sm:$0xff]  ;;  %s2085_s9 = smov 127   ;;  %vm1506_vm0 = vcmask 523264   ;;  %vm1587_vm1 = vcmask 7168  }
   0xc   : > { %v2128_v1 = vld [vmem:[%s2960_s2 + $0x40] sm:$0xff]  ;;  %v2140_v4 = vld [vmem:[%s2960_s2 + $0x48] sm:$0xff]  ;;  %s2086_s27 = smov 126   ;;  %vm1619_vm2 = vcmask 0  }
   0xd   : > { %v1676_v3 = vcombine.high %v2123_v0, %v2128_v1  ;;  %s3011_s16 = smov (!%p186_p3, %s1668_s16), 1  ;;  %v1678_v5 = vcombine.high %v2133_v2, %v2140_v4 }
   0xe   : > { %s1742_s25 = sshll.u32 %s3011_s16, 11  ;;  %s193_s5 = scalar_lea.vmem %s2962_s4, %s3011_s16 }
   0xf   : > { %995 = vmatprep.mubr.bf16.mxu0 %v1676_v3  ;;  %1060 = vmatprep.mubr.bf16.mxu1 %v1678_v5  ;;  %s2150_s28 = scalar_lea.vmem %s2958_s0, %s1742_s25 }
  0x10   : > { %v225_v6 = vld [vmem:[%s2150_s28 + $0xf0] sm:$0xff]  ;;  %v226_v7 = vld [vmem:[%s2150_s28 + $0xf8] sm:$0xff]  ;;  %v223_v17 = vld [vmem:[%s2150_s28 + $0xe0] sm:$0xff] }
  0x11   : > { %v257_v8 = vld [vmem:[%s2150_s28 + $0x1f0] sm:$0xff]  ;;  %v466_v9 = vpack.c.bf16 %v226_v7, %v225_v6  ;;  %v258_v10 = vld [vmem:[%s2150_s28 + $0x1f8] sm:$0xff]  ;;  %v224_v19 = vld [vmem:[%s2150_s28 + $0xe8] sm:$0xff] }
  0x12   : > { %v209_v11 = vld [vmem:[%s2150_s28 + $0x70] sm:$0xff]  ;;  %v210_v12 = vld [vmem:[%s2150_s28 + $0x78] sm:$0xff]  ;;  %v482_v13 = vpack.c.bf16 %v258_v10, %v257_v8  ;;  %v255_v20 = vld [vmem:[%s2150_s28 + $0x1e0] sm:$0xff]  ;;  %v465_v22 = vpack.c.bf16 %v224_v19, %v223_v17 }
  0x13   : > { %v458_v14 = vpack.c.bf16 %v210_v12, %v209_v11  ;;  %v241_v15 = vld [vmem:[%s2150_s28 + $0x170] sm:$0xff]  ;;  %v242_v16 = vld [vmem:[%s2150_s28 + $0x178] sm:$0xff]  ;;  %1743 = vmatprep.subr.bf16.mxu0 %v466_v9  ;;  %v256_v21 = vld [vmem:[%s2150_s28 + $0x1e8] sm:$0xff] }
  0x14   : > { %v474_v18 = vpack.c.bf16 %v242_v16, %v241_v15  ;;  %1783 = vmatprep.subr.bf16.mxu1 %v482_v13  ;;  %v481_v23 = vpack.c.bf16 %v256_v21, %v255_v20  ;;  %v207_v24 = vld [vmem:[%s2150_s28 + $0x60] sm:$0xff]  ;;  %v208_v25 = vld [vmem:[%s2150_s28 + $0x68] sm:$0xff]  ;;  %v221_v29 = vld [vmem:[%s2150_s28 + $0xd0] sm:$0xff] }
  0x15   : > { %1744 = vmatpush3.bf16.msra.mxu0 %v458_v14  ;;  %v239_v26 = vld [vmem:[%s2150_s28 + $0x160] sm:$0xff]  ;;  %v457_v27 = vpack.c.bf16 %v208_v25, %v207_v24  ;;  %v240_v28 = vld [vmem:[%s2150_s28 + $0x168] sm:$0xff]  ;;  %v222_v30 = vld [vmem:[%s2150_s28 + $0xd8] sm:$0xff] }
  0x16   : > { %1784 = vmatpush3.bf16.msra.mxu1 %v474_v18  ;;  %1745 = vmatprep.subr.bf16.mxu0 %v465_v22  ;;  %v473_v31 = vpack.c.bf16 %v240_v28, %v239_v26  ;;  %v464_v32 = vpack.c.bf16 %v222_v30, %v221_v29  ;;  %v253_v33 = vld [vmem:[%s2150_s28 + $0x1d0] sm:$0xff]  ;;  %v254_v34 = vld [vmem:[%s2150_s28 + $0x1d8] sm:$0xff]  ;;  %v219_v41 = vld [vmem:[%s2150_s28 + $0xc0] sm:$0xff] }
  0x17   : > { %1785 = vmatprep.subr.bf16.mxu1 %v481_v23  ;;  %v205_v35 = vld [vmem:[%s2150_s28 + $0x50] sm:$0xff]  ;;  %v480_v36 = vpack.c.bf16 %v254_v34, %v253_v33  ;;  %v206_v37 = vld [vmem:[%s2150_s28 + $0x58] sm:$0xff]  ;;  %v220_v42 = vld [vmem:[%s2150_s28 + $0xc8] sm:$0xff] }
  0x18   : > { %v237_v38 = vld [vmem:[%s2150_s28 + $0x150] sm:$0xff]  ;;  %v238_v39 = vld [vmem:[%s2150_s28 + $0x158] sm:$0xff]  ;;  %v456_v40 = vpack.c.bf16 %v206_v37, %v205_v35  ;;  %v251_v43 = vld [vmem:[%s2150_s28 + $0x1c0] sm:$0xff]  ;;  %v463_v45 = vpack.c.bf16 %v220_v42, %v219_v41 }
  0x19   : > { %1746 = vmatpush3.bf16.msra.mxu0 %v457_v27  ;;  %v472_v44 = vpack.c.bf16 %v238_v39, %v237_v38  ;;  %v252_v46 = vld [vmem:[%s2150_s28 + $0x1c8] sm:$0xff]  ;;  %v203_v47 = vld [vmem:[%s2150_s28 + $0x40] sm:$0xff]  ;;  %v217_v52 = vld [vmem:[%s2150_s28 + $0xb0] sm:$0xff] }
  0x1a   : > { %1786 = vmatpush3.bf16.msra.mxu1 %v473_v31  ;;  %1747 = vmatprep.subr.bf16.mxu0 %v464_v32  ;;  %v204_v48 = vld [vmem:[%s2150_s28 + $0x48] sm:$0xff]  ;;  %v479_v49 = vpack.c.bf16 %v252_v46, %v251_v43  ;;  %v235_v50 = vld [vmem:[%s2150_s28 + $0x140] sm:$0xff]  ;;  %v218_v53 = vld [vmem:[%s2150_s28 + $0xb8] sm:$0xff] }
  0x1b   : > { %1787 = vmatprep.subr.bf16.mxu1 %v480_v36  ;;  %v236_v51 = vld [vmem:[%s2150_s28 + $0x148] sm:$0xff]  ;;  %v249_v54 = vld [vmem:[%s2150_s28 + $0x1b0] sm:$0xff]  ;;  %v250_v55 = vld [vmem:[%s2150_s28 + $0x1b8] sm:$0xff]  ;;  %v455_v56 = vpack.c.bf16 %v204_v48, %v203_v47  ;;  %v462_v58 = vpack.c.bf16 %v218_v53, %v217_v52 }
  0x1c   : > { %v471_v57 = vpack.c.bf16 %v236_v51, %v235_v50  ;;  %v201_v59 = vld [vmem:[%s2150_s28 + $0x30] sm:$0xff]  ;;  %v202_v60 = vld [vmem:[%s2150_s28 + $0x38] sm:$0xff]  ;;  %v478_v62 = vpack.c.bf16 %v250_v55, %v249_v54  ;;  %v215_v3 = vld [vmem:[%s2150_s28 + $0xa0] sm:$0xff]  ;;  %v1675_v55 = vcombine.low %v2123_v0, %v2128_v1 }
  0x1d   : > { %1748 = vmatpush3.bf16.msra.mxu0 %v456_v40  ;;  %v233_v61 = vld [vmem:[%s2150_s28 + $0x130] sm:$0xff]  ;;  %v234_v63 = vld [vmem:[%s2150_s28 + $0x138] sm:$0xff]  ;;  %v216_v5 = vld [vmem:[%s2150_s28 + $0xa8] sm:$0xff]  ;;  %v454_v8 = vpack.c.bf16 %v202_v60, %v201_v59  ;;  %v1677_v59 = vcombine.low %v2133_v2, %v2140_v4 }
  0x1e   : > { %1788 = vmatpush3.bf16.msra.mxu1 %v472_v44  ;;  %1749 = vmatprep.subr.bf16.mxu0 %v463_v45  ;;  %v247_v6 = vld [vmem:[%s2150_s28 + $0x1a0] sm:$0xff]  ;;  %v248_v7 = vld [vmem:[%s2150_s28 + $0x1a8] sm:$0xff]  ;;  %v470_v9 = vpack.c.bf16 %v234_v63, %v233_v61  ;;  %v461_v10 = vpack.c.bf16 %v216_v5, %v215_v3  ;;  %v213_v16 = vld [vmem:[%s2150_s28 + $0x90] sm:$0xff] }
  0x1f   : > { %1789 = vmatprep.subr.bf16.mxu1 %v479_v49  ;;  %v199_v11 = vld [vmem:[%s2150_s28 + $0x20] sm:$0xff]  ;;  %v200_v12 = vld [vmem:[%s2150_s28 + $0x28] sm:$0xff]  ;;  %v477_v14 = vpack.c.bf16 %v248_v7, %v247_v6  ;;  %v214_v17 = vld [vmem:[%s2150_s28 + $0x98] sm:$0xff] }
  0x20   : > { %v231_v13 = vld [vmem:[%s2150_s28 + $0x120] sm:$0xff]  ;;  %v232_v15 = vld [vmem:[%s2150_s28 + $0x128] sm:$0xff]  ;;  %v245_v18 = vld [vmem:[%s2150_s28 + $0x190] sm:$0xff]  ;;  %v453_v20 = vpack.c.bf16 %v200_v12, %v199_v11  ;;  %v460_v22 = vpack.c.bf16 %v214_v17, %v213_v16 }
  0x21   : > { %1750 = vmatpush3.bf16.msra.mxu0 %v455_v56  ;;  %v246_v19 = vld [vmem:[%s2150_s28 + $0x198] sm:$0xff]  ;;  %v469_v21 = vpack.c.bf16 %v232_v15, %v231_v13  ;;  %v197_v23 = vld [vmem:[%s2150_s28 + $0x10] sm:$0xff]  ;;  %v211_v28 = vld [vmem:[%s2150_s28 + $0x80] sm:$0xff] }
  0x22   : > { %1790 = vmatpush3.bf16.msra.mxu1 %v471_v57  ;;  %1751 = vmatprep.subr.bf16.mxu0 %v462_v58  ;;  %v198_v24 = vld [vmem:[%s2150_s28 + $0x18] sm:$0xff]  ;;  %v229_v25 = vld [vmem:[%s2150_s28 + $0x110] sm:$0xff]  ;;  %v476_v26 = vpack.c.bf16 %v246_v19, %v245_v18  ;;  %v212_v29 = vld [vmem:[%s2150_s28 + $0x88] sm:$0xff] }
  0x23   : > { %1791 = vmatprep.subr.bf16.mxu1 %v478_v62  ;;  %v230_v27 = vld [vmem:[%s2150_s28 + $0x118] sm:$0xff]  ;;  %v243_v30 = vld [vmem:[%s2150_s28 + $0x180] sm:$0xff]  ;;  %v244_v31 = vld [vmem:[%s2150_s28 + $0x188] sm:$0xff]  ;;  %v452_v32 = vpack.c.bf16 %v198_v24, %v197_v23  ;;  %v459_v34 = vpack.c.bf16 %v212_v29, %v211_v28 }
  0x24   : > { %v468_v33 = vpack.c.bf16 %v230_v27, %v229_v25  ;;  %v195_v35 = vld [vmem:[%s2150_s28] sm:$0xff]  ;;  %v196_v36 = vld [vmem:[%s2150_s28 + $0x8] sm:$0xff]  ;;  %v475_v38 = vpack.c.bf16 %v244_v31, %v243_v30  ;;  %v289_v40 = vld [vmem:[%s2150_s28 + $0x2f0] sm:$0xff] }
  0x25   : > { %1752 = vmatpush3.bf16.msra.mxu0 %v454_v8  ;;  %v227_v37 = vld [vmem:[%s2150_s28 + $0x100] sm:$0xff]  ;;  %v228_v39 = vld [vmem:[%s2150_s28 + $0x108] sm:$0xff]  ;;  %v290_v41 = vld [vmem:[%s2150_s28 + $0x2f8] sm:$0xff]  ;;  %v451_v44 = vpack.c.bf16 %v196_v36, %v195_v35 }
  0x26   : > { %1792 = vmatpush3.bf16.msra.mxu1 %v470_v9  ;;  %1753 = vmatprep.subr.bf16.mxu0 %v461_v10  ;;  %v321_v42 = vld [vmem:[%s2150_s28 + $0x3f0] sm:$0xff]  ;;  %v322_v43 = vld [vmem:[%s2150_s28 + $0x3f8] sm:$0xff]  ;;  %v467_v45 = vpack.c.bf16 %v228_v39, %v227_v37  ;;  %v498_v46 = vpack.c.bf16 %v290_v41, %v289_v40  ;;  %v2226_v50 = vld [vmem:[%s2960_s2 + $0x80] sm:$0xff] }
  0x27   : > { %1793 = vmatprep.subr.bf16.mxu1 %v477_v14  ;;  %v273_v47 = vld [vmem:[%s2150_s28 + $0x270] sm:$0xff]  ;;  %v274_v48 = vld [vmem:[%s2150_s28 + $0x278] sm:$0xff]  ;;  %v514_v51 = vpack.c.bf16 %v322_v43, %v321_v42  ;;  %v287_v53 = vld [vmem:[%s2150_s28 + $0x2e0] sm:$0xff] }
  0x28   : > { %v305_v49 = vld [vmem:[%s2150_s28 + $0x370] sm:$0xff]  ;;  %v306_v52 = vld [vmem:[%s2150_s28 + $0x378] sm:$0xff]  ;;  %v288_v54 = vld [vmem:[%s2150_s28 + $0x2e8] sm:$0xff]  ;;  %v490_v60 = vpack.c.bf16 %v274_v48, %v273_v47 }
  0x29   : > { %1754 = vmatpush3.bf16.msra.mxu0 %v453_v20  ;;  %v319_v56 = vld [vmem:[%s2150_s28 + $0x3e0] sm:$0xff]  ;;  %v320_v57 = vld [vmem:[%s2150_s28 + $0x3e8] sm:$0xff]  ;;  %v506_v1 = vpack.c.bf16 %v306_v52, %v305_v49  ;;  %v497_v62 = vpack.c.bf16 %v288_v54, %v287_v53  ;;  %v285_v7 = vld [vmem:[%s2150_s28 + $0x2d0] sm:$0xff] }
  0x2a   : > { %1794 = vmatpush3.bf16.msra.mxu1 %v469_v21  ;;  %1755 = vmatprep.subr.bf16.mxu0 %v460_v22  ;;  %v2238_v58 = vld [vmem:[%s2960_s2 + $0xc0] sm:$0xff]  ;;  %v2245_v61 = vld [vmem:[%s2960_s2 + $0x88] sm:$0xff]  ;;  %v513_v4 = vpack.c.bf16 %v320_v57, %v319_v56  ;;  %v286_v8 = vld [vmem:[%s2150_s28 + $0x2d8] sm:$0xff] }
  0x2b   : > { %1795 = vmatprep.subr.bf16.mxu1 %v476_v26  ;;  %v604_v0 = vld [vmem:[%s2960_s2 + $0xc8] sm:$0xff]  ;;  %v271_v63 = vld [vmem:[%s2150_s28 + $0x260] sm:$0xff]  ;;  %v1692_v6 = vcombine.high %v2226_v50, %v2238_v58  ;;  %v317_v10 = vld [vmem:[%s2150_s28 + $0x3d0] sm:$0xff]  ;;  %v496_v14 = vpack.c.bf16 %v286_v8, %v285_v7  ;;  %v1691_v23 = vcombine.low %v2226_v50, %v2238_v58 }
  0x2c   : > { %v272_v3 = vld [vmem:[%s2150_s28 + $0x268] sm:$0xff]  ;;  %v303_v2 = vld [vmem:[%s2150_s28 + $0x360] sm:$0xff]  ;;  %v1694_v9 = vcombine.high %v2245_v61, %v604_v0  ;;  %v318_v11 = vld [vmem:[%s2150_s28 + $0x3d8] sm:$0xff]  ;;  %v1693_v27 = vcombine.low %v2245_v61, %v604_v0 }
  0x2d   : > { %1756 = vmatpush3.bf16.msra.mxu0 %v452_v32  ;;  %v304_v5 = vld [vmem:[%s2150_s28 + $0x368] sm:$0xff]  ;;  %v489_v12 = vpack.c.bf16 %v272_v3, %v271_v63  ;;  %v269_v15 = vld [vmem:[%s2150_s28 + $0x250] sm:$0xff]  ;;  %v270_v16 = vld [vmem:[%s2150_s28 + $0x258] sm:$0xff]  ;;  %v512_v19 = vpack.c.bf16 %v318_v11, %v317_v10 }
  0x2e   : > { %1796 = vmatpush3.bf16.msra.mxu1 %v468_v33  ;;  %1757 = vmatprep.subr.bf16.mxu0 %v459_v34  ;;  %v505_v13 = vpack.c.bf16 %v304_v5, %v303_v2  ;;  %v301_v17 = vld [vmem:[%s2150_s28 + $0x350] sm:$0xff]  ;;  %v2267_v18 = vld [vmem:[%s2960_s2 + $0x100] sm:$0xff]  ;;  %v302_v20 = vld [vmem:[%s2150_s28 + $0x358] sm:$0xff]  ;;  %v488_v28 = vpack.c.bf16 %v270_v16, %v269_v15 }
  0x2f   : > { %1797 = vmatprep.subr.bf16.mxu1 %v475_v38  ;;  %v283_v21 = vld [vmem:[%s2150_s28 + $0x2c0] sm:$0xff]  ;;  %v284_v22 = vld [vmem:[%s2150_s28 + $0x2c8] sm:$0xff]  ;;  %v504_v31 = vpack.c.bf16 %v302_v20, %v301_v17  ;;  %v281_v39 = vld [vmem:[%s2150_s28 + $0x2b0] sm:$0xff] }
  0x30   : > { %v315_v24 = vld [vmem:[%s2150_s28 + $0x3c0] sm:$0xff]  ;;  %v316_v25 = vld [vmem:[%s2150_s28 + $0x3c8] sm:$0xff]  ;;  %v495_v32 = vpack.c.bf16 %v284_v22, %v283_v21  ;;  %v282_v40 = vld [vmem:[%s2150_s28 + $0x2b8] sm:$0xff] }
  0x31   : > { %1758 = vmatpush3.bf16.msra.mxu0 %v451_v44  ;;  %v2279_v26 = vld [vmem:[%s2960_s2 + $0x140] sm:$0xff]  ;;  %v2285_v29 = vld [vmem:[%s2960_s2 + $0x108] sm:$0xff]  ;;  %v511_v36 = vpack.c.bf16 %v316_v25, %v315_v24  ;;  %v313_v42 = vld [vmem:[%s2150_s28 + $0x3b0] sm:$0xff] }
  0x32   : > { %1798 = vmatpush3.bf16.msra.mxu1 %v467_v45  ;;  %1823 = vmatprep.subr.bf16.mxu0 %v498_v46  ;;  %v620_v30 = vld [vmem:[%s2960_s2 + $0x148] sm:$0xff]  ;;  %v267_v33 = vld [vmem:[%s2150_s28 + $0x240] sm:$0xff]  ;;  %v1708_v38 = vcombine.high %v2267_v18, %v2279_v26  ;;  %v314_v43 = vld [vmem:[%s2150_s28 + $0x3b8] sm:$0xff]  ;;  %v494_v46 = vpack.c.bf16 %v282_v40, %v281_v39 }
  0x33   : > { %1863 = vmatprep.subr.bf16.mxu1 %v514_v51  ;;  %v268_v34 = vld [vmem:[%s2150_s28 + $0x248] sm:$0xff]  ;;  %v299_v35 = vld [vmem:[%s2150_s28 + $0x340] sm:$0xff]  ;;  %v1710_v41 = vcombine.high %v2285_v29, %v620_v30  ;;  %v265_v47 = vld [vmem:[%s2150_s28 + $0x230] sm:$0xff]  ;;  %v510_v51 = vpack.c.bf16 %v314_v43, %v313_v42 }
  0x34   : > { %996 = vmatmul.mubr.bf16.vlgmr.msra.gmra.mxu0 %v1675_v55  ;;  %v300_v37 = vld [vmem:[%s2150_s28 + $0x348] sm:$0xff]  ;;  %v487_v44 = vpack.c.bf16 %v268_v34, %v267_v33  ;;  %v266_v48 = vld [vmem:[%s2150_s28 + $0x238] sm:$0xff]  ;;  %v297_v49 = vld [vmem:[%s2150_s28 + $0x330] sm:$0xff]  ;;  %v1707_v55 = vcombine.low %v2267_v18, %v2279_v26 }
  0x35   : > { %1061 = vmatmul.mubr.bf16.vlgmr.msra.gmra.mxu1 %v1677_v59  ;;  %1824 = vmatpush3.bf16.msra.mxu0 %v490_v60  ;;  %v503_v45 = vpack.c.bf16 %v300_v37, %v299_v35  ;;  %v2307_v50 = vld [vmem:[%s2960_s2 + $0x180] sm:$0xff]  ;;  %v298_v52 = vld [vmem:[%s2150_s28 + $0x338] sm:$0xff]  ;;  %v280_v54 = vld [vmem:[%s2150_s28 + $0x2a8] sm:$0xff]  ;;  %v1709_v59 = vcombine.low %v2285_v29, %v620_v30  ;;  %v486_v60 = vpack.c.bf16 %v266_v48, %v265_v47 }
  0x36   : > { %1864 = vmatpush3.bf16.msra.mxu1 %v506_v1  ;;  %1825 = vmatprep.subr.bf16.mxu0 %v497_v62  ;;  %v279_v53 = vld [vmem:[%s2150_s28 + $0x2a0] sm:$0xff]  ;;  %v312_v57 = vld [vmem:[%s2150_s28 + $0x3a8] sm:$0xff]  ;;  %v502_v1 = vpack.c.bf16 %v298_v52, %v297_v49  ;;  %v277_v7 = vld [vmem:[%s2150_s28 + $0x290] sm:$0xff] }
  0x37   : > { %1865 = vmatprep.subr.bf16.mxu1 %v513_v4  ;;  %1003 = vmatprep.mubr.bf16.mxu0 %v1692_v6  ;;  %v311_v56 = vld [vmem:[%s2150_s28 + $0x3a0] sm:$0xff]  ;;  %v2325_v61 = vld [vmem:[%s2960_s2 + $0x188] sm:$0xff]  ;;  %v493_v62 = vpack.c.bf16 %v280_v54, %v279_v53  ;;  %v278_v8 = vld [vmem:[%s2150_s28 + $0x298] sm:$0xff] }
  0x38   : > { %1068 = vmatprep.mubr.bf16.mxu1 %v1694_v9  ;;  %v2319_v58 = vld [vmem:[%s2960_s2 + $0x1c0] sm:$0xff]  ;;  %v636_v0 = vld [vmem:[%s2960_s2 + $0x1c8] sm:$0xff]  ;;  %v509_v4 = vpack.c.bf16 %v312_v57, %v311_v56  ;;  %v309_v10 = vld [vmem:[%s2150_s28 + $0x390] sm:$0xff] }
  0x39   : > { %1826 = vmatpush3.bf16.msra.mxu0 %v489_v12  ;;  %v263_v63 = vld [vmem:[%s2150_s28 + $0x220] sm:$0xff]  ;;  %v264_v3 = vld [vmem:[%s2150_s28 + $0x228] sm:$0xff]  ;;  %v1724_v6 = vcombine.high %v2307_v50, %v2319_v58  ;;  %v1726_v9 = vcombine.high %v2325_v61, %v636_v0  ;;  %v310_v11 = vld [vmem:[%s2150_s28 + $0x398] sm:$0xff] }
  0x3a   : > { %1866 = vmatpush3.bf16.msra.mxu1 %v505_v13  ;;  %1827 = vmatprep.subr.bf16.mxu0 %v496_v14  ;;  %v295_v2 = vld [vmem:[%s2150_s28 + $0x320] sm:$0xff]  ;;  %v296_v5 = vld [vmem:[%s2150_s28 + $0x328] sm:$0xff]  ;;  %v485_v12 = vpack.c.bf16 %v264_v3, %v263_v63  ;;  %v492_v14 = vpack.c.bf16 %v278_v8, %v277_v7  ;;  %v261_v15 = vld [vmem:[%s2150_s28 + $0x210] sm:$0xff] }
  0x3b   : > { %1867 = vmatprep.subr.bf16.mxu1 %v512_v19  ;;  %v501_v13 = vpack.c.bf16 %v296_v5, %v295_v2  ;;  %v262_v16 = vld [vmem:[%s2150_s28 + $0x218] sm:$0xff]  ;;  %v293_v17 = vld [vmem:[%s2150_s28 + $0x310] sm:$0xff]  ;;  %v508_v19 = vpack.c.bf16 %v310_v11, %v309_v10  ;;  %v275_v21 = vld [vmem:[%s2150_s28 + $0x280] sm:$0xff] }
  0x3c   : > { %1004 = vmatmul.mubr.bf16.gmra.mxu0 %v1691_v23  ;;  %v2347_v18 = vld [vmem:[%s2960_s2 + $0x10] sm:$0xff]  ;;  %v294_v20 = vld [vmem:[%s2150_s28 + $0x318] sm:$0xff]  ;;  %v276_v22 = vld [vmem:[%s2150_s28 + $0x288] sm:$0xff]  ;;  %v1723_v23 = vcombine.low %v2307_v50, %v2319_v58 }
  0x3d   : > { %1069 = vmatmul.mubr.bf16.gmra.mxu1 %v1693_v27  ;;  %1828 = vmatpush3.bf16.msra.mxu0 %v488_v28  ;;  %v307_v24 = vld [vmem:[%s2150_s28 + $0x380] sm:$0xff]  ;;  %v308_v25 = vld [vmem:[%s2150_s28 + $0x388] sm:$0xff]  ;;  %v2359_v26 = vld [vmem:[%s2960_s2 + $0x50] sm:$0xff]  ;;  %v1725_v27 = vcombine.low %v2325_v61, %v636_v0  ;;  %v484_v28 = vpack.c.bf16 %v262_v16, %v261_v15 }
  0x3e   : > { %1868 = vmatpush3.bf16.msra.mxu1 %v504_v31  ;;  %1829 = vmatprep.subr.bf16.mxu0 %v495_v32  ;;  %v2365_v29 = vld [vmem:[%s2960_s2 + $0x18] sm:$0xff]  ;;  %v500_v31 = vpack.c.bf16 %v294_v20, %v293_v17  ;;  %v491_v32 = vpack.c.bf16 %v276_v22, %v275_v21  ;;  %v259_v33 = vld [vmem:[%s2150_s28 + $0x200] sm:$0xff]  ;;  %v260_v34 = vld [vmem:[%s2150_s28 + $0x208] sm:$0xff] }
  0x3f   : > { %1869 = vmatprep.subr.bf16.mxu1 %v511_v36  ;;  %1011 = vmatprep.mubr.bf16.mxu0 %v1708_v38  ;;  %v590_v30 = vld [vmem:[%s2960_s2 + $0x58] sm:$0xff]  ;;  %v291_v35 = vld [vmem:[%s2150_s28 + $0x300] sm:$0xff]  ;;  %v507_v36 = vpack.c.bf16 %v308_v25, %v307_v24  ;;  %v292_v37 = vld [vmem:[%s2150_s28 + $0x308] sm:$0xff]  ;;  %v1680_v38 = vcombine.high %v2347_v18, %v2359_v26 }
  0x40   : > { %1076 = vmatprep.mubr.bf16.mxu1 %v1710_v41  ;;  %v353_v39 = vld [vmem:[%s2150_s28 + $0x4f0] sm:$0xff]  ;;  %v354_v40 = vld [vmem:[%s2150_s28 + $0x4f8] sm:$0xff]  ;;  %v1682_v41 = vcombine.high %v2365_v29, %v590_v30  ;;  %v351_v52 = vld [vmem:[%s2150_s28 + $0x4e0] sm:$0xff] }
  0x41   : > { %1830 = vmatpush3.bf16.msra.mxu0 %v487_v44  ;;  %v385_v42 = vld [vmem:[%s2150_s28 + $0x5f0] sm:$0xff]  ;;  %v386_v43 = vld [vmem:[%s2150_s28 + $0x5f8] sm:$0xff]  ;;  %v483_v44 = vpack.c.bf16 %v260_v34, %v259_v33  ;;  %v530_v47 = vpack.c.bf16 %v354_v40, %v353_v39  ;;  %v352_v53 = vld [vmem:[%s2150_s28 + $0x4e8] sm:$0xff] }
  0x42   : > { %1870 = vmatpush3.bf16.msra.mxu1 %v503_v45  ;;  %1831 = vmatprep.subr.bf16.mxu0 %v494_v46  ;;  %v337_v45 = vld [vmem:[%s2150_s28 + $0x470] sm:$0xff]  ;;  %v499_v46 = vpack.c.bf16 %v292_v37, %v291_v35  ;;  %v338_v48 = vld [vmem:[%s2150_s28 + $0x478] sm:$0xff]  ;;  %v383_v54 = vld [vmem:[%s2150_s28 + $0x5e0] sm:$0xff] }
  0x43   : > { %1871 = vmatprep.subr.bf16.mxu1 %v510_v51  ;;  %v369_v49 = vld [vmem:[%s2150_s28 + $0x570] sm:$0xff]  ;;  %v370_v50 = vld [vmem:[%s2150_s28 + $0x578] sm:$0xff]  ;;  %v546_v51 = vpack.c.bf16 %v386_v43, %v385_v42  ;;  %v384_v56 = vld [vmem:[%s2150_s28 + $0x5e8] sm:$0xff] }
  0x44   : > { %1012 = vmatmul.mubr.bf16.gmra.mxu0 %v1707_v55  ;;  %v1679_v55 = vcombine.low %v2347_v18, %v2359_v26  ;;  %v2394_v57 = vld [vmem:[%s2960_s2 + $0x90] sm:$0xff]  ;;  %v2405_v61 = vld [vmem:[%s2960_s2 + $0x98] sm:$0xff]  ;;  %v335_v63 = vld [vmem:[%s2150_s28 + $0x460] sm:$0xff] }
  0x45   : > { %1077 = vmatmul.mubr.bf16.gmra.mxu1 %v1709_v59  ;;  %1832 = vmatpush3.bf16.msra.mxu0 %v486_v60  ;;  %v2399_v58 = vld [vmem:[%s2960_s2 + $0xd0] sm:$0xff]  ;;  %v1681_v59 = vcombine.low %v2365_v29, %v590_v30  ;;  %v522_v60 = vpack.c.bf16 %v338_v48, %v337_v45  ;;  %v606_v0 = vld [vmem:[%s2960_s2 + $0xd8] sm:$0xff]  ;;  %v336_v3 = vld [vmem:[%s2150_s28 + $0x468] sm:$0xff] }
  0x46   : > { %1872 = vmatpush3.bf16.msra.mxu1 %v502_v1  ;;  %1833 = vmatprep.subr.bf16.mxu0 %v493_v62  ;;  %v538_v1 = vpack.c.bf16 %v370_v50, %v369_v49  ;;  %v529_v62 = vpack.c.bf16 %v352_v53, %v351_v52  ;;  %v367_v2 = vld [vmem:[%s2150_s28 + $0x560] sm:$0xff]  ;;  %v368_v5 = vld [vmem:[%s2150_s28 + $0x568] sm:$0xff]  ;;  %v349_v7 = vld [vmem:[%s2150_s28 + $0x4d0] sm:$0xff] }
  0x47   : > { %1873 = vmatprep.subr.bf16.mxu1 %v509_v4  ;;  %1019 = vmatprep.mubr.bf16.mxu0 %v1724_v6  ;;  %v545_v4 = vpack.c.bf16 %v384_v56, %v383_v54  ;;  %v1696_v6 = vcombine.high %v2394_v57, %v2399_v58  ;;  %v350_v8 = vld [vmem:[%s2150_s28 + $0x4d8] sm:$0xff]  ;;  %v381_v10 = vld [vmem:[%s2150_s28 + $0x5d0] sm:$0xff]  ;;  %v347_v20 = vld [vmem:[%s2150_s28 + $0x4c0] sm:$0xff] }
  0x48   : > { %1084 = vmatprep.mubr.bf16.mxu1 %v1726_v9  ;;  %v1698_v9 = vcombine.high %v2405_v61, %v606_v0  ;;  %v382_v11 = vld [vmem:[%s2150_s28 + $0x5d8] sm:$0xff]  ;;  %v528_v15 = vpack.c.bf16 %v350_v8, %v349_v7  ;;  %v365_v17 = vld [vmem:[%s2150_s28 + $0x550] sm:$0xff]  ;;  %v348_v21 = vld [vmem:[%s2150_s28 + $0x4c8] sm:$0xff] }
  0x49   : > { %1834 = vmatpush3.bf16.msra.mxu0 %v485_v12  ;;  %v521_v12 = vpack.c.bf16 %v336_v3, %v335_v63  ;;  %v334_v16 = vld [vmem:[%s2150_s28 + $0x458] sm:$0xff]  ;;  %v379_v22 = vld [vmem:[%s2150_s28 + $0x5c0] sm:$0xff]  ;;  %v380_v24 = vld [vmem:[%s2150_s28 + $0x5c8] sm:$0xff] }
  0x4a   : > { %1874 = vmatpush3.bf16.msra.mxu1 %v501_v13  ;;  %1835 = vmatprep.subr.bf16.mxu0 %v492_v14  ;;  %v333_v13 = vld [vmem:[%s2150_s28 + $0x450] sm:$0xff]  ;;  %v537_v14 = vpack.c.bf16 %v368_v5, %v367_v2  ;;  %v366_v18 = vld [vmem:[%s2150_s28 + $0x558] sm:$0xff]  ;;  %v331_v33 = vld [vmem:[%s2150_s28 + $0x440] sm:$0xff] }
  0x4b   : > { %1875 = vmatprep.subr.bf16.mxu1 %v508_v19  ;;  %v544_v19 = vpack.c.bf16 %v382_v11, %v381_v10  ;;  %v2434_v25 = vld [vmem:[%s2960_s2 + $0x110] sm:$0xff]  ;;  %v2445_v29 = vld [vmem:[%s2960_s2 + $0x118] sm:$0xff]  ;;  %v332_v34 = vld [vmem:[%s2150_s28 + $0x448] sm:$0xff] }
  0x4c   : > { %1020 = vmatmul.mubr.bf16.gmra.mxu0 %v1723_v23  ;;  %v1695_v23 = vcombine.low %v2394_v57, %v2399_v58  ;;  %v2439_v26 = vld [vmem:[%s2960_s2 + $0x150] sm:$0xff]  ;;  %v622_v30 = vld [vmem:[%s2960_s2 + $0x158] sm:$0xff]  ;;  %v363_v35 = vld [vmem:[%s2150_s28 + $0x540] sm:$0xff] }
  0x4d   : > { %1085 = vmatmul.mubr.bf16.gmra.mxu1 %v1725_v27  ;;  %1836 = vmatpush3.bf16.msra.mxu0 %v484_v28  ;;  %v1697_v27 = vcombine.low %v2405_v61, %v606_v0  ;;  %v520_v28 = vpack.c.bf16 %v334_v16, %v333_v13  ;;  %v364_v37 = vld [vmem:[%s2150_s28 + $0x548] sm:$0xff]  ;;  %v345_v39 = vld [vmem:[%s2150_s28 + $0x4b0] sm:$0xff]  ;;  %v346_v40 = vld [vmem:[%s2150_s28 + $0x4b8] sm:$0xff] }
  0x4e   : > { %1876 = vmatpush3.bf16.msra.mxu1 %v500_v31  ;;  %1837 = vmatprep.subr.bf16.mxu0 %v491_v32  ;;  %v536_v31 = vpack.c.bf16 %v366_v18, %v365_v17  ;;  %v527_v32 = vpack.c.bf16 %v348_v21, %v347_v20  ;;  %v377_v42 = vld [vmem:[%s2150_s28 + $0x5b0] sm:$0xff]  ;;  %v378_v43 = vld [vmem:[%s2150_s28 + $0x5b8] sm:$0xff]  ;;  %v343_v52 = vld [vmem:[%s2150_s28 + $0x4a0] sm:$0xff] }
  0x4f   : > { %1877 = vmatprep.subr.bf16.mxu1 %v507_v36  ;;  %1125 = vmatprep.mubr.bf16.mxu0 %v1680_v38  ;;  %v543_v36 = vpack.c.bf16 %v380_v24, %v379_v22  ;;  %v1712_v38 = vcombine.high %v2434_v25, %v2439_v26  ;;  %v329_v45 = vld [vmem:[%s2150_s28 + $0x430] sm:$0xff]  ;;  %v330_v48 = vld [vmem:[%s2150_s28 + $0x438] sm:$0xff]  ;;  %v344_v53 = vld [vmem:[%s2150_s28 + $0x4a8] sm:$0xff] }
  0x50   : > { %1190 = vmatprep.mubr.bf16.mxu1 %v1682_v41  ;;  %v1714_v41 = vcombine.high %v2445_v29, %v622_v30  ;;  %v361_v49 = vld [vmem:[%s2150_s28 + $0x530] sm:$0xff]  ;;  %v362_v50 = vld [vmem:[%s2150_s28 + $0x538] sm:$0xff]  ;;  %v375_v54 = vld [vmem:[%s2150_s28 + $0x5a0] sm:$0xff] }
  0x51   : > { %1838 = vmatpush3.bf16.msra.mxu0 %v483_v44  ;;  %v519_v44 = vpack.c.bf16 %v332_v34, %v331_v33  ;;  %v376_v56 = vld [vmem:[%s2150_s28 + $0x5a8] sm:$0xff]  ;;  %v2474_v57 = vld [vmem:[%s2960_s2 + $0x190] sm:$0xff]  ;;  %v2485_v61 = vld [vmem:[%s2960_s2 + $0x198] sm:$0xff] }
  0x52   : > { %1878 = vmatpush3.bf16.msra.mxu1 %v499_v46  ;;  %1903 = vmatprep.subr.bf16.mxu0 %v530_v47  ;;  %v535_v46 = vpack.c.bf16 %v364_v37, %v363_v35  ;;  %v526_v47 = vpack.c.bf16 %v346_v40, %v345_v39  ;;  %v2479_v58 = vld [vmem:[%s2960_s2 + $0x1d0] sm:$0xff]  ;;  %v638_v0 = vld [vmem:[%s2960_s2 + $0x1d8] sm:$0xff]  ;;  %v327_v63 = vld [vmem:[%s2150_s28 + $0x420] sm:$0xff] }
  0x53   : > { %1943 = vmatprep.subr.bf16.mxu1 %v546_v51  ;;  %v542_v51 = vpack.c.bf16 %v378_v43, %v377_v42  ;;  %v328_v3 = vld [vmem:[%s2150_s28 + $0x428] sm:$0xff]  ;;  %v359_v2 = vld [vmem:[%s2150_s28 + $0x520] sm:$0xff]  ;;  %v341_v7 = vld [vmem:[%s2150_s28 + $0x490] sm:$0xff] }
  0x54   : > { %1126 = vmatmul.mubr.bf16.vlgmr.msra.gmra.mxu0 %v1679_v55  ;;  %v1711_v55 = vcombine.low %v2434_v25, %v2439_v26  ;;  %v360_v5 = vld [vmem:[%s2150_s28 + $0x528] sm:$0xff]  ;;  %v342_v8 = vld [vmem:[%s2150_s28 + $0x498] sm:$0xff]  ;;  %v373_v10 = vld [vmem:[%s2150_s28 + $0x590] sm:$0xff] }
  0x55   : > { %1191 = vmatmul.mubr.bf16.vlgmr.msra.gmra.mxu1 %v1681_v59  ;;  %1904 = vmatpush3.bf16.msra.mxu0 %v522_v60  ;;  %v1713_v59 = vcombine.low %v2445_v29, %v622_v30  ;;  %v518_v60 = vpack.c.bf16 %v330_v48, %v329_v45  ;;  %v374_v11 = vld [vmem:[%s2150_s28 + $0x598] sm:$0xff]  ;;  %v325_v13 = vld [vmem:[%s2150_s28 + $0x410] sm:$0xff]  ;;  %v339_v20 = vld [vmem:[%s2150_s28 + $0x480] sm:$0xff] }
  0x56   : > { %1944 = vmatpush3.bf16.msra.mxu1 %v538_v1  ;;  %1905 = vmatprep.subr.bf16.mxu0 %v529_v62  ;;  %v534_v1 = vpack.c.bf16 %v362_v50, %v361_v49  ;;  %v525_v62 = vpack.c.bf16 %v344_v53, %v343_v52  ;;  %v326_v16 = vld [vmem:[%s2150_s28 + $0x418] sm:$0xff]  ;;  %v357_v17 = vld [vmem:[%s2150_s28 + $0x510] sm:$0xff]  ;;  %v340_v21 = vld [vmem:[%s2150_s28 + $0x488] sm:$0xff] }
  0x57   : > { %1945 = vmatprep.subr.bf16.mxu1 %v545_v4  ;;  %1133 = vmatprep.mubr.bf16.mxu0 %v1696_v6  ;;  %v541_v4 = vpack.c.bf16 %v376_v56, %v375_v54  ;;  %v1728_v6 = vcombine.high %v2474_v57, %v2479_v58  ;;  %v358_v18 = vld [vmem:[%s2150_s28 + $0x518] sm:$0xff]  ;;  %v371_v22 = vld [vmem:[%s2150_s28 + $0x580] sm:$0xff]  ;;  %v372_v24 = vld [vmem:[%s2150_s28 + $0x588] sm:$0xff] }
  0x58   : > { %1198 = vmatprep.mubr.bf16.mxu1 %v1698_v9  ;;  %v1730_v9 = vcombine.high %v2485_v61, %v638_v0  ;;  %v2514_v25 = vld [vmem:[%s2960_s2 + $0x20] sm:$0xff]  ;;  %v2525_v29 = vld [vmem:[%s2960_s2 + $0x28] sm:$0xff]  ;;  %v417_v39 = vld [vmem:[%s2150_s28 + $0x6f0] sm:$0xff] }
  0x59   : > { %1906 = vmatpush3.bf16.msra.mxu0 %v521_v12  ;;  %v517_v12 = vpack.c.bf16 %v328_v3, %v327_v63  ;;  %v2519_v26 = vld [vmem:[%s2960_s2 + $0x60] sm:$0xff]  ;;  %v592_v30 = vld [vmem:[%s2960_s2 + $0x68] sm:$0xff]  ;;  %v418_v40 = vld [vmem:[%s2150_s28 + $0x6f8] sm:$0xff] }
  0x5a   : > { %1946 = vmatpush3.bf16.msra.mxu1 %v537_v14  ;;  %1907 = vmatprep.subr.bf16.mxu0 %v528_v15  ;;  %v533_v14 = vpack.c.bf16 %v360_v5, %v359_v2  ;;  %v524_v15 = vpack.c.bf16 %v342_v8, %v341_v7  ;;  %v323_v33 = vld [vmem:[%s2150_s28 + $0x400] sm:$0xff]  ;;  %v324_v34 = vld [vmem:[%s2150_s28 + $0x408] sm:$0xff]  ;;  %v449_v42 = vld [vmem:[%s2150_s28 + $0x7f0] sm:$0xff] }
  0x5b   : > { %1947 = vmatprep.subr.bf16.mxu1 %v544_v19  ;;  %v540_v19 = vpack.c.bf16 %v374_v11, %v373_v10  ;;  %v355_v35 = vld [vmem:[%s2150_s28 + $0x500] sm:$0xff]  ;;  %v356_v37 = vld [vmem:[%s2150_s28 + $0x508] sm:$0xff]  ;;  %v450_v43 = vld [vmem:[%s2150_s28 + $0x7f8] sm:$0xff] }
  0x5c   : > { %1134 = vmatmul.mubr.bf16.gmra.mxu0 %v1695_v23  ;;  %v1727_v23 = vcombine.low %v2474_v57, %v2479_v58  ;;  %v401_v45 = vld [vmem:[%s2150_s28 + $0x670] sm:$0xff]  ;;  %v402_v48 = vld [vmem:[%s2150_s28 + $0x678] sm:$0xff]  ;;  %v415_v52 = vld [vmem:[%s2150_s28 + $0x6e0] sm:$0xff] }
  0x5d   : > { %1199 = vmatmul.mubr.bf16.gmra.mxu1 %v1697_v27  ;;  %1908 = vmatpush3.bf16.msra.mxu0 %v520_v28  ;;  %v1729_v27 = vcombine.low %v2485_v61, %v638_v0  ;;  %v516_v28 = vpack.c.bf16 %v326_v16, %v325_v13  ;;  %v433_v49 = vld [vmem:[%s2150_s28 + $0x770] sm:$0xff]  ;;  %v434_v50 = vld [vmem:[%s2150_s28 + $0x778] sm:$0xff]  ;;  %v416_v53 = vld [vmem:[%s2150_s28 + $0x6e8] sm:$0xff] }
  0x5e   : > { %1948 = vmatpush3.bf16.msra.mxu1 %v536_v31  ;;  %1909 = vmatprep.subr.bf16.mxu0 %v527_v32  ;;  %v532_v31 = vpack.c.bf16 %v358_v18, %v357_v17  ;;  %v523_v32 = vpack.c.bf16 %v340_v21, %v339_v20  ;;  %v447_v54 = vld [vmem:[%s2150_s28 + $0x7e0] sm:$0xff]  ;;  %v448_v56 = vld [vmem:[%s2150_s28 + $0x7e8] sm:$0xff]  ;;  %v413_v7 = vld [vmem:[%s2150_s28 + $0x6d0] sm:$0xff] }
  0x5f   : > { %1949 = vmatprep.subr.bf16.mxu1 %v543_v36  ;;  %1141 = vmatprep.mubr.bf16.mxu0 %v1712_v38  ;;  %v539_v36 = vpack.c.bf16 %v372_v24, %v371_v22  ;;  %v1684_v38 = vcombine.high %v2514_v25, %v2519_v26  ;;  %v2554_v57 = vld [vmem:[%s2960_s2 + $0xa0] sm:$0xff]  ;;  %v2565_v61 = vld [vmem:[%s2960_s2 + $0xa8] sm:$0xff]  ;;  %v414_v8 = vld [vmem:[%s2150_s28 + $0x6d8] sm:$0xff] }
  0x60   : > { %1206 = vmatprep.mubr.bf16.mxu1 %v1714_v41  ;;  %v1686_v41 = vcombine.high %v2525_v29, %v592_v30  ;;  %v2559_v58 = vld [vmem:[%s2960_s2 + $0xe0] sm:$0xff]  ;;  %v608_v0 = vld [vmem:[%s2960_s2 + $0xe8] sm:$0xff]  ;;  %v445_v10 = vld [vmem:[%s2150_s28 + $0x7d0] sm:$0xff] }
  0x61   : > { %1910 = vmatpush3.bf16.msra.mxu0 %v519_v44  ;;  %v515_v44 = vpack.c.bf16 %v324_v34, %v323_v33  ;;  %v399_v63 = vld [vmem:[%s2150_s28 + $0x660] sm:$0xff]  ;;  %v400_v3 = vld [vmem:[%s2150_s28 + $0x668] sm:$0xff]  ;;  %v446_v11 = vld [vmem:[%s2150_s28 + $0x7d8] sm:$0xff] }
  0x62   : > { %1950 = vmatpush3.bf16.msra.mxu1 %v535_v46  ;;  %1911 = vmatprep.subr.bf16.mxu0 %v526_v47  ;;  %v531_v46 = vpack.c.bf16 %v356_v37, %v355_v35  ;;  %v562_v47 = vpack.c.bf16 %v418_v40, %v417_v39  ;;  %v431_v2 = vld [vmem:[%s2150_s28 + $0x760] sm:$0xff]  ;;  %v432_v5 = vld [vmem:[%s2150_s28 + $0x768] sm:$0xff]  ;;  %v397_v13 = vld [vmem:[%s2150_s28 + $0x650] sm:$0xff] }
  0x63   : > { %1951 = vmatprep.subr.bf16.mxu1 %v542_v51  ;;  %v578_v51 = vpack.c.bf16 %v450_v43, %v449_v42  ;;  %v398_v16 = vld [vmem:[%s2150_s28 + $0x658] sm:$0xff]  ;;  %v429_v17 = vld [vmem:[%s2150_s28 + $0x750] sm:$0xff]  ;;  %v411_v20 = vld [vmem:[%s2150_s28 + $0x6c0] sm:$0xff] }
  0x64   : > { %1142 = vmatmul.mubr.bf16.gmra.mxu0 %v1711_v55  ;;  %v1683_v55 = vcombine.low %v2514_v25, %v2519_v26  ;;  %v430_v18 = vld [vmem:[%s2150_s28 + $0x758] sm:$0xff]  ;;  %v412_v21 = vld [vmem:[%s2150_s28 + $0x6c8] sm:$0xff]  ;;  %v443_v22 = vld [vmem:[%s2150_s28 + $0x7c0] sm:$0xff] }
  0x65   : > { %1207 = vmatmul.mubr.bf16.gmra.mxu1 %v1713_v59  ;;  %1912 = vmatpush3.bf16.msra.mxu0 %v518_v60  ;;  %v1685_v59 = vcombine.low %v2525_v29, %v592_v30  ;;  %v554_v60 = vpack.c.bf16 %v402_v48, %v401_v45  ;;  %v444_v24 = vld [vmem:[%s2150_s28 + $0x7c8] sm:$0xff]  ;;  %v2594_v25 = vld [vmem:[%s2960_s2 + $0x120] sm:$0xff]  ;;  %v409_v39 = vld [vmem:[%s2150_s28 + $0x6b0] sm:$0xff] }
  0x66   : > { %1952 = vmatpush3.bf16.msra.mxu1 %v534_v1  ;;  %1913 = vmatprep.subr.bf16.mxu0 %v525_v62  ;;  %v570_v1 = vpack.c.bf16 %v434_v50, %v433_v49  ;;  %v561_v62 = vpack.c.bf16 %v416_v53, %v415_v52  ;;  %v2599_v26 = vld [vmem:[%s2960_s2 + $0x160] sm:$0xff]  ;;  %v2605_v29 = vld [vmem:[%s2960_s2 + $0x128] sm:$0xff]  ;;  %v410_v40 = vld [vmem:[%s2150_s28 + $0x6b8] sm:$0xff] }
  0x67   : > { %1953 = vmatprep.subr.bf16.mxu1 %v541_v4  ;;  %1149 = vmatprep.mubr.bf16.mxu0 %v1728_v6  ;;  %v577_v4 = vpack.c.bf16 %v448_v56, %v447_v54  ;;  %v1700_v6 = vcombine.high %v2554_v57, %v2559_v58  ;;  %v624_v30 = vld [vmem:[%s2960_s2 + $0x168] sm:$0xff]  ;;  %v395_v33 = vld [vmem:[%s2150_s28 + $0x640] sm:$0xff]  ;;  %v441_v42 = vld [vmem:[%s2150_s28 + $0x7b0] sm:$0xff] }
  0x68   : > { %1214 = vmatprep.mubr.bf16.mxu1 %v1730_v9  ;;  %v1702_v9 = vcombine.high %v2565_v61, %v608_v0  ;;  %v396_v34 = vld [vmem:[%s2150_s28 + $0x648] sm:$0xff]  ;;  %v427_v35 = vld [vmem:[%s2150_s28 + $0x740] sm:$0xff]  ;;  %v442_v43 = vld [vmem:[%s2150_s28 + $0x7b8] sm:$0xff] }
  0x69   : > { %1914 = vmatpush3.bf16.msra.mxu0 %v517_v12  ;;  %v553_v12 = vpack.c.bf16 %v400_v3, %v399_v63  ;;  %v428_v37 = vld [vmem:[%s2150_s28 + $0x748] sm:$0xff]  ;;  %v393_v45 = vld [vmem:[%s2150_s28 + $0x630] sm:$0xff]  ;;  %v394_v48 = vld [vmem:[%s2150_s28 + $0x638] sm:$0xff] }
  0x6a   : > { %1954 = vmatpush3.bf16.msra.mxu1 %v533_v14  ;;  %1915 = vmatprep.subr.bf16.mxu0 %v524_v15  ;;  %v569_v14 = vpack.c.bf16 %v432_v5, %v431_v2  ;;  %v560_v15 = vpack.c.bf16 %v414_v8, %v413_v7  ;;  %v425_v49 = vld [vmem:[%s2150_s28 + $0x730] sm:$0xff]  ;;  %v426_v50 = vld [vmem:[%s2150_s28 + $0x738] sm:$0xff]  ;;  %v407_v52 = vld [vmem:[%s2150_s28 + $0x6a0] sm:$0xff] }
  0x6b   : > { %1955 = vmatprep.subr.bf16.mxu1 %v540_v19  ;;  %v576_v19 = vpack.c.bf16 %v446_v11, %v445_v10  ;;  %v408_v53 = vld [vmem:[%s2150_s28 + $0x6a8] sm:$0xff]  ;;  %v439_v54 = vld [vmem:[%s2150_s28 + $0x7a0] sm:$0xff]  ;;  %v405_v7 = vld [vmem:[%s2150_s28 + $0x690] sm:$0xff] }
  0x6c   : > { %1150 = vmatmul.mubr.bf16.gmra.mxu0 %v1727_v23  ;;  %v1699_v23 = vcombine.low %v2554_v57, %v2559_v58  ;;  %v440_v56 = vld [vmem:[%s2150_s28 + $0x7a8] sm:$0xff]  ;;  %v631_v57 = vld [vmem:[%s2960_s2 + $0x1a0] sm:$0xff]  ;;  %v406_v8 = vld [vmem:[%s2150_s28 + $0x698] sm:$0xff] }
  0x6d   : > { %1215 = vmatmul.mubr.bf16.gmra.mxu1 %v1729_v27  ;;  %1916 = vmatpush3.bf16.msra.mxu0 %v516_v28  ;;  %v1701_v27 = vcombine.low %v2565_v61, %v608_v0  ;;  %v552_v28 = vpack.c.bf16 %v398_v16, %v397_v13  ;;  %v639_v58 = vld [vmem:[%s2960_s2 + $0x1e0] sm:$0xff]  ;;  %v632_v61 = vld [vmem:[%s2960_s2 + $0x1a8] sm:$0xff]  ;;  %v437_v10 = vld [vmem:[%s2150_s28 + $0x790] sm:$0xff] }
  0x6e   : > { %1956 = vmatpush3.bf16.msra.mxu1 %v532_v31  ;;  %1917 = vmatprep.subr.bf16.mxu0 %v523_v32  ;;  %v568_v31 = vpack.c.bf16 %v430_v18, %v429_v17  ;;  %v559_v32 = vpack.c.bf16 %v412_v21, %v411_v20  ;;  %v640_v0 = vld [vmem:[%s2960_s2 + $0x1e8] sm:$0xff]  ;;  %v391_v63 = vld [vmem:[%s2150_s28 + $0x620] sm:$0xff]  ;;  %v438_v11 = vld [vmem:[%s2150_s28 + $0x798] sm:$0xff] }
  0x6f   : > { %1957 = vmatprep.subr.bf16.mxu1 %v539_v36  ;;  %1255 = vmatprep.mubr.bf16.mxu0 %v1684_v38  ;;  %v575_v36 = vpack.c.bf16 %v444_v24, %v443_v22  ;;  %v1716_v38 = vcombine.high %v2594_v25, %v2599_v26  ;;  %v392_v3 = vld [vmem:[%s2150_s28 + $0x628] sm:$0xff]  ;;  %v423_v2 = vld [vmem:[%s2150_s28 + $0x720] sm:$0xff]  ;;  %v389_v13 = vld [vmem:[%s2150_s28 + $0x610] sm:$0xff] }
  0x70   : > { %1320 = vmatprep.mubr.bf16.mxu1 %v1686_v41  ;;  %v1718_v41 = vcombine.high %v2605_v29, %v624_v30  ;;  %v424_v5 = vld [vmem:[%s2150_s28 + $0x728] sm:$0xff]  ;;  %v390_v16 = vld [vmem:[%s2150_s28 + $0x618] sm:$0xff]  ;;  %v421_v17 = vld [vmem:[%s2150_s28 + $0x710] sm:$0xff] }
  0x71   : > { %1918 = vmatpush3.bf16.msra.mxu0 %v515_v44  ;;  %v551_v44 = vpack.c.bf16 %v396_v34, %v395_v33  ;;  %v422_v18 = vld [vmem:[%s2150_s28 + $0x718] sm:$0xff]  ;;  %v403_v20 = vld [vmem:[%s2150_s28 + $0x680] sm:$0xff]  ;;  %v404_v21 = vld [vmem:[%s2150_s28 + $0x688] sm:$0xff] }
  0x72   : > { %1958 = vmatpush3.bf16.msra.mxu1 %v531_v46  ;;  %1983 = vmatprep.subr.bf16.mxu0 %v562_v47  ;;  %v567_v46 = vpack.c.bf16 %v428_v37, %v427_v35  ;;  %v558_v47 = vpack.c.bf16 %v410_v40, %v409_v39  ;;  %v435_v22 = vld [vmem:[%s2150_s28 + $0x780] sm:$0xff]  ;;  %v436_v24 = vld [vmem:[%s2150_s28 + $0x788] sm:$0xff] }
  0x73   : > { %2023 = vmatprep.subr.bf16.mxu1 %v578_v51  ;;  %v574_v51 = vpack.c.bf16 %v442_v43, %v441_v42  ;;  %v387_v33 = vld [vmem:[%s2150_s28 + $0x600] sm:$0xff]  ;;  %v388_v34 = vld [vmem:[%s2150_s28 + $0x608] sm:$0xff]  ;;  %v571_v35 = vpack.c.bf16 %v436_v24, %v435_v22  ;;  %v601_v42 = vld [vmem:[%s2960_s2 + $0xb0] sm:$0xff] }
  0x74   : > { %1256 = vmatmul.mubr.bf16.vlgmr.msra.gmra.mxu0 %v1683_v55  ;;  %v1715_v55 = vcombine.low %v2594_v25, %v2599_v26  ;;  %v585_v25 = vld [vmem:[%s2960_s2 + $0x30] sm:$0xff]  ;;  %v420_v37 = vld [vmem:[%s2150_s28 + $0x708] sm:$0xff]  ;;  %v547_v40 = vpack.c.bf16 %v388_v34, %v387_v33 }
  0x75   : > { %1321 = vmatmul.mubr.bf16.vlgmr.msra.gmra.mxu1 %v1685_v59  ;;  %1984 = vmatpush3.bf16.msra.mxu0 %v554_v60  ;;  %v1717_v59 = vcombine.low %v2605_v29, %v624_v30  ;;  %v550_v60 = vpack.c.bf16 %v394_v48, %v393_v45  ;;  %v593_v26 = vld [vmem:[%s2960_s2 + $0x70] sm:$0xff]  ;;  %v586_v29 = vld [vmem:[%s2960_s2 + $0x38] sm:$0xff] }
  0x76   : > { %2024 = vmatpush3.bf16.msra.mxu1 %v570_v1  ;;  %1985 = vmatprep.subr.bf16.mxu0 %v561_v62  ;;  %v566_v1 = vpack.c.bf16 %v426_v50, %v425_v49  ;;  %v557_v62 = vpack.c.bf16 %v408_v53, %v407_v52  ;;  %v594_v30 = vld [vmem:[%s2960_s2 + $0x78] sm:$0xff]  ;;  %v609_v43 = vld [vmem:[%s2960_s2 + $0xf0] sm:$0xff] }
  0x77   : > { %2025 = vmatprep.subr.bf16.mxu1 %v577_v4  ;;  %1263 = vmatprep.mubr.bf16.mxu0 %v1700_v6  ;;  %v573_v4 = vpack.c.bf16 %v440_v56, %v439_v54  ;;  %v1732_v6 = vcombine.high %v631_v57, %v639_v58  ;;  %v1690_v39 = vcombine.high %v586_v29, %v594_v30  ;;  %v610_v45 = vld [vmem:[%s2960_s2 + $0xf8] sm:$0xff]  ;;  %v617_v50 = vld [vmem:[%s2960_s2 + $0x130] sm:$0xff] }
  0x78   : > { %1328 = vmatprep.mubr.bf16.mxu1 %v1702_v9  ;;  %v1734_v9 = vcombine.high %v632_v61, %v640_v0  ;;  %v1704_v48 = vcombine.high %v601_v42, %v609_v43  ;;  %v618_v52 = vld [vmem:[%s2960_s2 + $0x138] sm:$0xff]  ;;  %v1703_v54 = vcombine.low %v601_v42, %v609_v43 }
  0x79   : > { %1986 = vmatpush3.bf16.msra.mxu0 %v553_v12  ;;  %v549_v12 = vpack.c.bf16 %v392_v3, %v391_v63  ;;  %v626_v53 = vld [vmem:[%s2960_s2 + $0x178] sm:$0xff] }
  0x7a   : > { %2026 = vmatpush3.bf16.msra.mxu1 %v569_v14  ;;  %1987 = vmatprep.subr.bf16.mxu0 %v560_v15  ;;  %v565_v14 = vpack.c.bf16 %v424_v5, %v423_v2  ;;  %v556_v15 = vpack.c.bf16 %v406_v8, %v405_v7  ;;  %v2722_v5 = vld [vmem:[%s2961_s3 + $0x10] sm:$0xff]  ;;  %v2736_v7 = vld [vmem:[%s2961_s3 + $0x18] sm:$0xff]  ;;  %v2743_v8 = vld [vmem:[%s2961_s3 + $0x20] sm:$0xff] }
  0x7b   : > { %2027 = vmatprep.subr.bf16.mxu1 %v576_v19  ;;  %v572_v19 = vpack.c.bf16 %v438_v11, %v437_v10  ;;  %2971 = vst [vmem:[#allocation3_spill] sm:$0xff] %v2722_v5  ;;  %2973 = vst [vmem:[#allocation5_spill] sm:$0xff] %v2736_v7 }
  0x7c   : > { %1264 = vmatmul.mubr.bf16.gmra.mxu0 %v1699_v23  ;;  %v1731_v23 = vcombine.low %v631_v57, %v639_v58  ;;  %v1722_v57 = vcombine.high %v618_v52, %v626_v53  ;;  %v633_v58 = vld [vmem:[%s2960_s2 + $0x1b0] sm:$0xff]  ;;  %2974 = vst [vmem:[#allocation6_spill] sm:$0xff] %v2743_v8 }
  0x7d   : > { %1329 = vmatmul.mubr.bf16.gmra.mxu1 %v1701_v27  ;;  %1988 = vmatpush3.bf16.msra.mxu0 %v552_v28  ;;  %v1733_v27 = vcombine.low %v632_v61, %v640_v0  ;;  %v548_v28 = vpack.c.bf16 %v390_v16, %v389_v13  ;;  %v642_v61 = vld [vmem:[%s2960_s2 + $0x1f8] sm:$0xff] }
  0x7e   : > { %2028 = vmatpush3.bf16.msra.mxu1 %v568_v31  ;;  %1989 = vmatprep.subr.bf16.mxu0 %v559_v32  ;;  %v564_v31 = vpack.c.bf16 %v422_v18, %v421_v17  ;;  %v555_v32 = vpack.c.bf16 %v404_v21, %v403_v20 }
  0x7f   : > { %2029 = vmatprep.subr.bf16.mxu1 %v575_v36  ;;  %1271 = vmatprep.mubr.bf16.mxu0 %v1716_v38  ;;  %v419_v36 = vld [vmem:[%s2150_s28 + $0x700] sm:$0xff]  ;;  %v1688_v38 = vcombine.high %v585_v25, %v593_v26 }
  0x80   : > { %1336 = vmatprep.mubr.bf16.mxu1 %v1718_v41  ;;  %v563_v41 = vpack.c.bf16 %v420_v37, %v419_v36 }
  0x81   : > { %1990 = vmatpush3.bf16.msra.mxu0 %v551_v44  ;;  %v602_v44 = vld [vmem:[%s2960_s2 + $0xb8] sm:$0xff] }
  0x82   : > { %2030 = vmatpush3.bf16.msra.mxu1 %v567_v46  ;;  %1991 = vmatprep.subr.bf16.mxu0 %v558_v47  ;;  %v1687_v46 = vcombine.low %v585_v25, %v593_v26  ;;  %v1689_v47 = vcombine.low %v586_v29, %v594_v30  ;;  %v1706_v49 = vcombine.high %v602_v44, %v610_v45 }
  0x83   : > { %2031 = vmatprep.subr.bf16.mxu1 %v574_v51  ;;  %v625_v51 = vld [vmem:[%s2960_s2 + $0x170] sm:$0xff] }
  0x84   : > { %1272 = vmatmul.mubr.bf16.gmra.mxu0 %v1715_v55  ;;  %v1705_v55 = vcombine.low %v602_v44, %v610_v45  ;;  %v1720_v56 = vcombine.high %v617_v50, %v625_v51  ;;  %v1719_v0 = vcombine.low %v617_v50, %v625_v51 }
  0x85   : > { %1337 = vmatmul.mubr.bf16.gmra.mxu1 %v1717_v59  ;;  %1992 = vmatpush3.bf16.msra.mxu0 %v550_v60  ;;  %v641_v59 = vld [vmem:[%s2960_s2 + $0x1f0] sm:$0xff]  ;;  %v634_v60 = vld [vmem:[%s2960_s2 + $0x1b8] sm:$0xff] }
  0x86   : > { %2032 = vmatpush3.bf16.msra.mxu1 %v566_v1  ;;  %1993 = vmatprep.subr.bf16.mxu0 %v557_v62  ;;  %v1721_v1 = vcombine.low %v618_v52, %v626_v53  ;;  %v1736_v62 = vcombine.high %v633_v58, %v641_v59  ;;  %v1738_v63 = vcombine.high %v634_v60, %v642_v61 }
  0x87   : > { %2033 = vmatprep.subr.bf16.mxu1 %v573_v4  ;;  %1279 = vmatprep.mubr.bf16.mxu0 %v1732_v6  ;;  %v1735_v3 = vcombine.low %v633_v58, %v641_v59  ;;  %v1737_v2 = vcombine.low %v634_v60, %v642_v61  ;;  %v2715_v4 = vld [vmem:[%s2961_s3 + $0x8] sm:$0xff]  ;;  %v2729_v6 = vld [vmem:[%s2961_s3] sm:$0xff] }
  0x88   : > { %1344 = vmatprep.mubr.bf16.mxu1 %v1734_v9  ;;  %2970 = vst [vmem:[#allocation2_spill] sm:$0xff] %v2715_v4  ;;  %1557 = vrot.lane.b32.xlu1 %v2715_v4, %s2085_s9  ;;  %2972 = vst [vmem:[#allocation4_spill] sm:$0xff] %v2729_v6  ;;  %v2750_v9 = vld [vmem:[%s2961_s3 + $0x28] sm:$0xff] }
  0x89   : > { %1994 = vmatpush3.bf16.msra.mxu0 %v549_v12  ;;  %1555 = vrot.lane.b32.xlu0 %v2729_v6, %s2085_s9  ;;  %2975 = vst [vmem:[#allocation7_spill] sm:$0xff] %v2750_v9 }
  0x8a   : > { %2034 = vmatpush3.bf16.msra.mxu1 %v565_v14  ;;  %1995 = vmatprep.subr.bf16.mxu0 %v556_v15 }
  0x8b   : > { %2035 = vmatprep.subr.bf16.mxu1 %v572_v19 }
  0x8c   : > { %1280 = vmatmul.mubr.bf16.gmra.mxu0 %v1731_v23  ;;  %1559 = vrot.lane.b32.xlu1 %v2722_v5, %s2085_s9 }
  0x8d   : > { %1345 = vmatmul.mubr.bf16.gmra.mxu1 %v1733_v27  ;;  %1996 = vmatpush3.bf16.msra.mxu0 %v548_v28 }
  0x8e   : > { %2036 = vmatpush3.bf16.msra.mxu1 %v564_v31  ;;  %1997 = vmatprep.subr.bf16.mxu0 %v555_v32 }
  0x8f   : > { %2037 = vmatprep.subr.bf16.mxu1 %v571_v35  ;;  %1385 = vmatprep.mubr.bf16.mxu0 %v1688_v38 }
  0x90   : > { %1450 = vmatprep.mubr.bf16.mxu1 %v1690_v39  ;;  %1561 = vrot.lane.b32.xlu1 %v2736_v7, %s2085_s9 }
  0x91   : > { %1998 = vmatpush3.bf16.msra.mxu0 %v547_v40  ;;  %1563 = vrot.lane.b32.xlu0 %v2743_v8, %s2085_s9 }
  0x92   : > { %2038 = vmatpush3.bf16.msra.mxu1 %v563_v41 }
  0x94   : > { %1386 = vmatmul.mubr.bf16.vlgmr.msra.gmra.mxu0 %v1687_v46  ;;  %1565 = vrot.lane.b32.xlu1 %v2750_v9, %s2085_s9 }
  0x95   : > { %1451 = vmatmul.mubr.bf16.vlgmr.msra.gmra.mxu1 %v1689_v47  ;;  %1393 = vmatprep.mubr.bf16.mxu0 %v1704_v48 }
  0x96   : > { %1458 = vmatprep.mubr.bf16.mxu1 %v1706_v49 }
  0x9c   : > { %1394 = vmatmul.mubr.bf16.gmra.mxu0 %v1703_v54 }
  0x9d   : > { %1459 = vmatmul.mubr.bf16.gmra.mxu1 %v1705_v55  ;;  %1401 = vmatprep.mubr.bf16.mxu0 %v1720_v56 }
  0x9e   : > { %1466 = vmatprep.mubr.bf16.mxu1 %v1722_v57 }
  0xa4   : > { %1402 = vmatmul.mubr.bf16.gmra.mxu0 %v1719_v0 }
  0xa5   : > { %1467 = vmatmul.mubr.bf16.gmra.mxu1 %v1721_v1  ;;  %1409 = vmatprep.mubr.bf16.mxu0 %v1736_v62 }
  0xa6   : > { %1474 = vmatprep.mubr.bf16.mxu1 %v1738_v63 }
  0xac   : > { %1410 = vmatmul.mubr.bf16.gmra.mxu0 %v1735_v3 }
  0xad   : > { %1475 = vmatmul.mubr.bf16.gmra.mxu1 %v1737_v2 }
  0xf4   : > { %v1759_v10 = vpop.f32.mrf.mxu0 }
  0xf5   : > { %v1799_v11 = vpop.f32.mrf.mxu1 }
  0xf6   : > { %v1760_v12 = vpop.f32.mrf.mxu0 }
  0xf7   : > { %v1761_v13 = vadd.f32 %v1760_v12, %v1759_v10  ;;  %v1800_v14 = vpop.f32.mrf.mxu1 }
  0xf8   : > { %v1801_v15 = vadd.f32 %v1800_v14, %v1799_v11  ;;  %v1762_v16 = vpop.f32.mrf.mxu0 }
  0xf9   : > { %v1802_v17 = vpop.f32.mrf.mxu1 }
  0xfa   : > { %v2754_v18 = vadd.f32 %v1801_v15, %v1761_v13  ;;  %v1763_v19 = vpop.f32.mrf.mxu0 }
  0xfb   : > { %v1764_v20 = vadd.f32 %v1763_v19, %v1762_v16  ;;  %v1803_v21 = vpop.f32.mrf.mxu1 }
  0xfc   : > { %v1804_v22 = vadd.f32 %v1803_v21, %v1802_v17  ;;  %v1765_v23 = vpop.f32.mrf.mxu0 }
  0xfd   : > { %v1805_v24 = vpop.f32.mrf.mxu1 }
  0xfe   : > { %v2756_v25 = vadd.f32 %v1804_v22, %v1764_v20  ;;  %v1766_v26 = vpop.f32.mrf.mxu0 }
  0xff   : > { %v1767_v27 = vadd.f32 %v1766_v26, %v1765_v23  ;;  %v1806_v28 = vpop.f32.mrf.mxu1 }
 0x100   : > { %v1807_v29 = vadd.f32 %v1806_v28, %v1805_v24  ;;  %v1768_v30 = vpop.f32.mrf.mxu0 }
 0x101   : > { %v1808_v31 = vpop.f32.mrf.mxu1 }
 0x102   : > { %v2758_v32 = vadd.f32 %v1807_v29, %v1767_v27  ;;  %v1769_v33 = vpop.f32.mrf.mxu0 }
 0x103   : > { %v1770_v34 = vadd.f32 %v1769_v33, %v1768_v30  ;;  %v1809_v35 = vpop.f32.mrf.mxu1 }
 0x104   : > { %v1810_v36 = vadd.f32 %v1809_v35, %v1808_v31  ;;  %v1771_v37 = vpop.f32.mrf.mxu0 }
 0x105   : > { %v1811_v38 = vpop.f32.mrf.mxu1 }
 0x106   : > { %v2760_v39 = vadd.f32 %v1810_v36, %v1770_v34  ;;  %v1772_v40 = vpop.f32.mrf.mxu0 }
 0x107   : > { %v1773_v41 = vadd.f32 %v1772_v40, %v1771_v37  ;;  %v1812_v42 = vpop.f32.mrf.mxu1 }
 0x108   : > { %v1813_v43 = vadd.f32 %v1812_v42, %v1811_v38  ;;  %v1774_v44 = vpop.f32.mrf.mxu0 }
 0x109   : > { %v1814_v45 = vpop.f32.mrf.mxu1 }
 0x10a   : > { %v2762_v46 = vadd.f32 %v1813_v43, %v1773_v41  ;;  %v1775_v47 = vpop.f32.mrf.mxu0 }
 0x10b   : > { %v1776_v48 = vadd.f32 %v1775_v47, %v1774_v44  ;;  %v1815_v49 = vpop.f32.mrf.mxu1 }
 0x10c   : > { %v1816_v50 = vadd.f32 %v1815_v49, %v1814_v45  ;;  %v1777_v51 = vpop.f32.mrf.mxu0 }
 0x10d   : > { %v1817_v52 = vpop.f32.mrf.mxu1 }
 0x10e   : > { %v2764_v53 = vadd.f32 %v1816_v50, %v1776_v48  ;;  %v1778_v54 = vpop.f32.mrf.mxu0 }
 0x10f   : > { %v1779_v55 = vadd.f32 %v1778_v54, %v1777_v51  ;;  %v1818_v56 = vpop.f32.mrf.mxu1 }
 0x110   : > { %v1819_v57 = vadd.f32 %v1818_v56, %v1817_v52  ;;  %v1780_v58 = vpop.f32.mrf.mxu0 }
 0x111   : > { %v1820_v59 = vpop.f32.mrf.mxu1 }
 0x112   : > { %v2766_v60 = vadd.f32 %v1819_v57, %v1779_v55  ;;  %v1781_v61 = vpop.f32.mrf.mxu0 }
 0x113   : > { %v1782_v0 = vadd.f32 %v1781_v61, %v1780_v58  ;;  %v1821_v1 = vpop.f32.mrf.mxu1 }
 0x114   : > { %2976 = vst [vmem:[#allocation8_spill] sm:$0xff] %v2766_v60  ;;  %v1822_v62 = vadd.f32 %v1821_v1, %v1820_v59  ;;  %v1839_v63 = vpop.f32.mrf.mxu0 }
 0x115   : > { %v1879_v3 = vpop.f32.mrf.mxu1 }
 0x116   : > { %v2768_v2 = vadd.f32 %v1822_v62, %v1782_v0  ;;  %v1840_v10 = vpop.f32.mrf.mxu0 }
 0x117   : > { %v1880_v11 = vpop.f32.mrf.mxu1  ;;  %v1841_v5 = vadd.f32 %v1840_v10, %v1839_v63 }
 0x118   : > { %2977 = vst [vmem:[#allocation9_spill] sm:$0xff] %v2768_v2  ;;  %v1842_v12 = vpop.f32.mrf.mxu0 }
 0x119   : > { %v2770_v13 = vpop.f32.mrf.mxu1  ;;  %v1128_v2 = vadd.f32 %v1841_v5, %v2754_v18 }
 0x11a   : > { %v1843_v14 = vpop.f32.mrf.mxu0 }
 0x11b   : > { %v2772_v15 = vpop.f32.mrf.mxu1 }
 0x11c   : > { %v1845_v16 = vpop.f32.mrf.mxu0  ;;  %v1884_v5 = vadd.f32 %v2772_v15, %v2770_v13 }
 0x11d   : > { %v2774_v17 = vpop.f32.mrf.mxu1 }
 0x11e   : > { %v1846_v19 = vpop.f32.mrf.mxu0 }
 0x11f   : > { %v2776_v20 = vpop.f32.mrf.mxu1  ;;  %v1847_v63 = vadd.f32 %v1846_v19, %v1845_v16 }
 0x120   : > { %v2778_v21 = vpop.f32.mrf.mxu0 }
 0x121   : > { %v2780_v22 = vpop.f32.mrf.mxu1 }
 0x122   : > { %v1849_v23 = vpop.f32.mrf.mxu0 }
 0x123   : > { %v2782_v24 = vpop.f32.mrf.mxu1 }
 0x124   : > { %v2784_v26 = vpop.f32.mrf.mxu0 }
 0x125   : > { %v2786_v27 = vpop.f32.mrf.mxu1 }
 0x126   : > { %v2788_v28 = vpop.f32.mrf.mxu0 }
 0x127   : > { %v2790_v29 = vpop.f32.mrf.mxu1 }
 0x128   : > { %v2792_v30 = vpop.f32.mrf.mxu0 }
 0x129   : > { %v2794_v31 = vpop.f32.mrf.mxu1 }
 0x12a   : > { %v2796_v33 = vpop.f32.mrf.mxu0 }
 0x12b   : > { %v2798_v34 = vpop.f32.mrf.mxu1 }
 0x12c   : > { %v2800_v35 = vpop.f32.mrf.mxu0 }
 0x12d   : > { %v2802_v36 = vpop.f32.mrf.mxu1 }
 0x12e   : > { %2978 = vst [vmem:[#allocation10_spill] sm:$0xff] %v2802_v36  ;;  %v2804_v37 = vpop.f32.mrf.mxu0 }
 0x12f   : > { %v2806_v38 = vpop.f32.mrf.mxu1 }
 0x130   : > { %2979 = vst [vmem:[#allocation11_spill] sm:$0xff] %v2806_v38  ;;  %v2808_v40 = vpop.f32.mrf.mxu0  ;;  %v1844_v38 = vadd.f32 %v1843_v14, %v1842_v12 }
 0x131   : > { %2980 = vst [vmem:[#allocation12_spill] sm:$0xff] %v2808_v40  ;;  %v2810_v41 = vpop.f32.mrf.mxu1 }
 0x132   : > { %2981 = vst [vmem:[#allocation13_spill] sm:$0xff] %v2810_v41  ;;  %v2812_v42 = vpop.f32.mrf.mxu0  ;;  %v1131_v60 = vadd.f32 %v1844_v38, %v2756_v25  ;;  %v1887_v25 = vadd.f32 %v2776_v20, %v2774_v17  ;;  %v1890_v17 = vadd.f32 %v2782_v24, %v2780_v22 }
 0x133   : > { %2982 = vst [vmem:[#allocation14_spill] sm:$0xff] %v2812_v42  ;;  %v2814_v43 = vpop.f32.mrf.mxu1  ;;  %v1881_v42 = vadd.f32 %v1880_v11, %v1879_v3  ;;  %v1136_v3 = vadd.f32 %v1847_v63, %v2758_v32  ;;  %v1850_v11 = vadd.f32 %v1849_v23, %v2778_v21  ;;  %v1853_v32 = vadd.f32 %v2788_v28, %v2784_v26 }
 0x134   : > { %2983 = vst [vmem:[#allocation15_spill] sm:$0xff] %v2814_v43  ;;  %v1919_v44 = vpop.f32.mrf.mxu0  ;;  %v1196_v19 = vadd.f32 %v1884_v5, %v1131_v60  ;;  %v1856_v28 = vadd.f32 %v2796_v33, %v2792_v30 }
 0x135   : > { %v1959_v45 = vpop.f32.mrf.mxu1  ;;  %v1139_v15 = vadd.f32 %v1850_v11, %v2760_v39  ;;  %v1144_v24 = vadd.f32 %v1853_v32, %v2762_v46 }
 0x136   : > { %v1920_v47 = vpop.f32.mrf.mxu0  ;;  %v1147_v46 = vadd.f32 %v1856_v28, %v2764_v53 }
 0x137   : > { %v1960_v48 = vpop.f32.mrf.mxu1  ;;  %v1204_v26 = vadd.f32 %v1890_v17, %v1139_v15 }
 0x138   : > { %v1922_v49 = vpop.f32.mrf.mxu0 }
 0x139   : > { %v1962_v50 = vpop.f32.mrf.mxu1 }
 0x13a   : > { %v1923_v51 = vpop.f32.mrf.mxu0  ;;  %v2992_v32 = vld [vmem:[#allocation14_spill] sm:$0xff] }
 0x13b   : > { %v1963_v52 = vpop.f32.mrf.mxu1  ;;  %v1924_v12 = vadd.f32 %v1923_v51, %v1922_v49 }
 0x13c   : > { %v1925_v54 = vpop.f32.mrf.mxu0  ;;  %v1964_v21 = vadd.f32 %v1963_v52, %v1962_v50 }
 0x13d   : > { %v2816_v55 = vpop.f32.mrf.mxu1 }
 0x13e   : > { %v1926_v56 = vpop.f32.mrf.mxu0 }
 0x13f   : > { %v2818_v57 = vpop.f32.mrf.mxu1  ;;  %v1927_v38 = vadd.f32 %v1926_v56, %v1925_v54  ;;  %v2872_v54 = vld [vmem:[%s2959_s1] ss:$0 sm:$0xff] }
 0x140   : > { %v1928_v58 = vpop.f32.mrf.mxu0  ;;  %v1967_v50 = vadd.f32 %v2818_v57, %v2816_v55 }
 0x141   : > { %v2820_v59 = vpop.f32.mrf.mxu1 }
 0x142   : > { %v1929_v61 = vpop.f32.mrf.mxu0 }
 0x143   : > { %v2822_v0 = vpop.f32.mrf.mxu1 }
 0x144   : > { %v2824_v1 = vpop.f32.mrf.mxu0 }
 0x145   : > { %v2826_v62 = vpop.f32.mrf.mxu1 }
 0x146   : > { %2984 = vst [vmem:[#allocation16_spill] sm:$0xff] %v2826_v62  ;;  %v2828_v9 = vpop.f32.mrf.mxu0 }
 0x147   : > { %v2830_v8 = vpop.f32.mrf.mxu1  ;;  %v1933_v30 = vadd.f32 %v2828_v9, %v2824_v1  ;;  %v1896_v1 = vadd.f32 %v2798_v34, %v2794_v31 }
 0x148   : > { %2985 = vst [vmem:[#allocation17_spill] sm:$0xff] %v2830_v8  ;;  %v2832_v7 = vpop.f32.mrf.mxu0  ;;  %v1921_v8 = vadd.f32 %v1920_v47, %v1919_v44 }
 0x149   : > { %v2834_v4 = vpop.f32.mrf.mxu1 }
 0x14a   : > { %2986 = vst [vmem:[#allocation18_spill] sm:$0xff] %v2834_v4  ;;  %v2836_v6 = vpop.f32.mrf.mxu0  ;;  %v1193_v4 = vadd.f32 %v1881_v42, %v1128_v2  ;;  %v1961_v2 = vadd.f32 %v1960_v48, %v1959_v45  ;;  %v1930_v48 = vadd.f32 %v1929_v61, %v1928_v58 }
 0x14b   : > { %v2838_v43 = vpop.f32.mrf.mxu1  ;;  %v1936_v53 = vadd.f32 %v2836_v6, %v2832_v7 }
 0x14c   : > { %2987 = vst [vmem:[#allocation19_spill] sm:$0xff] %v2838_v43  ;;  %v2840_v41 = vpop.f32.mrf.mxu0  ;;  %v1258_v18 = vadd.f32 %v1921_v8, %v1193_v4  ;;  %v1201_v8 = vadd.f32 %v1887_v25, %v1136_v3  ;;  %v1269_v3 = vadd.f32 %v1930_v48, %v1204_v26  ;;  %v2996_v48 = vld [vmem:[#allocation11_spill] sm:$0xff] }
 0x14d   : > { %2988 = vst [vmem:[#allocation20_spill] sm:$0xff] %v2840_v41  ;;  %v2843_v36 = vpop.f32.mrf.mxu1  ;;  %v2993_v31 = vld [vmem:[#allocation16_spill] sm:$0xff] }
 0x14e   : > { %v2845_v62 = vpop.f32.mrf.mxu0  ;;  %v1323_v47 = vadd.f32 %v1961_v2, %v1258_v18  ;;  %v1266_v20 = vadd.f32 %v1927_v38, %v1201_v8  ;;  %v1970_v2 = vadd.f32 %v2822_v0, %v2820_v59  ;;  %v2990_v8 = vld [vmem:[#allocation8_spill] sm:$0xff] }
 0x14f   : > { %v2847_v40 = vpop.f32.mrf.mxu1  ;;  %v2994_v34 = vld [vmem:[#allocation17_spill] sm:$0xff] }
 0x150   : > { %v2849_v10 = vpop.f32.mrf.mxu0 }
 0x151   : > { %v2852_v43 = vpop.f32.mrf.mxu1 }
 0x152   : > { %2989 = vst [vmem:[#allocation21_spill] sm:$0xff] %v2852_v43  ;;  %v2854_v41 = vpop.f32.mrf.mxu0  ;;  %v1261_v43 = vadd.f32 %v1924_v12, %v1196_v19  ;;  %v1331_v12 = vadd.f32 %v1967_v50, %v1266_v20  ;;  %v1859_v19 = vadd.f32 %v2804_v37, %v2800_v35  ;;  %v2995_v20 = vld [vmem:[#allocation10_spill] sm:$0xff] }
 0x153   : > { %v2858_v14 = vpop.f32.mrf.mxu1 }
 0x154   : > { %v1999_v16 = vpop.f32.mrf.mxu0  ;;  %v1326_v39 = vadd.f32 %v1964_v21, %v1261_v43  ;;  %v1893_v43 = vadd.f32 %v2790_v29, %v2786_v27  ;;  %v1152_v15 = vadd.f32 %v1859_v19, %v2990_v8 }
 0x155   : > { %v2039_v42 = vpop.f32.mrf.mxu1 }
 0x156   : > { %v2000_v44 = vpop.f32.mrf.mxu0  ;;  %v1209_v29 = vadd.f32 %v1893_v43, %v1144_v24 }
 0x157   : > { %v2001_v13 = vadd.f32 %v2000_v44, %v1999_v16  ;;  %v2040_v4 = vpop.f32.mrf.mxu1  ;;  %v1334_v44 = vadd.f32 %v1970_v2, %v1269_v3 }
 0x158   : > { %v2002_v49 = vpop.f32.mrf.mxu0  ;;  %v2041_v23 = vadd.f32 %v2040_v4, %v2039_v42  ;;  %v1274_v35 = vadd.f32 %v1933_v30, %v1209_v29  ;;  %v1212_v4 = vadd.f32 %v1896_v1, %v1147_v46 }
 0x159   : > { %v1388_v60 = vadd.f32 %v2001_v13, %v1323_v47  ;;  %v2042_v45 = vpop.f32.mrf.mxu1 }
 0x15a   : > { %v2003_v51 = vpop.f32.mrf.mxu0 }
 0x15b   : > { %v1453_v56 = vadd.f32 %v2041_v23, %v1388_v60  ;;  %v2004_v63 = vadd.f32 %v2003_v51, %v2002_v49  ;;  %v2043_v5 = vpop.f32.mrf.mxu1  ;;  %v2991_v49 = vld [vmem:[#allocation12_spill] sm:$0xff]  ;;  %v1973_v23 = vadd.f32 %v2994_v34, %v2993_v31  ;;  %v1899_v51 = vadd.f32 %v2996_v48, %v2995_v20 }
 0x15c   : > { %v2005_v22 = vpop.f32.mrf.mxu0  ;;  %v2044_v58 = vadd.f32 %v2043_v5, %v2042_v45  ;;  %v1862_v21 = vadd.f32 %v2992_v32, %v2991_v49  ;;  %v3003_v49 = vld [vmem:[#allocation21_spill] sm:$0xff] }
 0x15d   : > { %v1391_v52 = vadd.f32 %v2004_v63, %v1326_v39  ;;  %v2045_v61 = vpop.f32.mrf.mxu1  ;;  %v1498_v18 = vmul.f32 %v2872_v54, %v1453_v56  ;;  %v1277_v39 = vadd.f32 %v1936_v53, %v1212_v4  ;;  %v2997_v56 = vld [vmem:[#allocation20_spill] sm:$0xff]  ;;  %v1339_v26 = vadd.f32 %v1973_v23, %v1274_v35 }
 0x15e   : > { %v2006_v11 = vpop.f32.mrf.mxu0  ;;  %v1939_v63 = vadd.f32 %v2845_v62, %v2997_v56 }
 0x15f   : > { %v1456_v33 = vadd.f32 %v2044_v58, %v1391_v52  ;;  %v2007_v55 = vadd.f32 %v2006_v11, %v2005_v22  ;;  %v2046_v57 = vpop.f32.mrf.mxu1  ;;  %v1507_v16 = vsel %vm1506_vm0, %v1498_v18, 0.0  ;;  %v1217_v52 = vadd.f32 %v1899_v51, %v1152_v15  ;;  %v2998_v58 = vld [vmem:[#allocation18_spill] sm:$0xff] }
 0x160   : > { %v2008_v27 = vpop.f32.mrf.mxu0  ;;  %1508 = vadd.xlane.f32.xlu0 %v1507_v16  ;;  %v2047_v25 = vadd.f32 %v2046_v57, %v2045_v61  ;;  %v2999_v61 = vld [vmem:[#allocation19_spill] sm:$0xff] }
 0x161   : > { %v1396_v42 = vadd.f32 %v2007_v55, %v1331_v12  ;;  %v2048_v38 = vpop.f32.mrf.mxu1  ;;  %v1499_v9 = vmul.f32 %v2872_v54, %v1456_v33  ;;  %v1976_v18 = vadd.f32 %v2999_v61, %v2998_v58  ;;  %v3000_v12 = vld [vmem:[#allocation9_spill] sm:$0xff]  ;;  %v3002_v57 = vld [vmem:[#allocation15_spill] sm:$0xff]  ;;  %v1282_v19 = vadd.f32 %v1939_v63, %v1217_v52 }
 0x162   : > { %v2009_v47 = vpop.f32.mrf.mxu0  ;;  %v1155_v3 = vadd.f32 %v1862_v21, %v3000_v12  ;;  %v3001_v55 = vld [vmem:[#allocation13_spill] sm:$0xff] }
 0x163   : > { %v1461_v37 = vadd.f32 %v2047_v25, %v1396_v42  ;;  %v2010_v13 = vadd.f32 %v2009_v47, %v2008_v27  ;;  %v2049_v59 = vpop.f32.mrf.mxu1  ;;  %v1510_v0 = vsel %vm1506_vm0, %v1499_v9, 0.0  ;;  %v1902_v16 = vadd.f32 %v3002_v57, %v3001_v55  ;;  %v1490_v63 = vld [vmem:[%s2961_s3 + $0x38] sm:$0xff] }
 0x164   : > { %v2011_v60 = vpop.f32.mrf.mxu0  ;;  %1511 = vadd.xlane.f32.xlu0 %v1510_v0  ;;  %v2050_v6 = vadd.f32 %v2049_v59, %v2048_v38  ;;  %v1342_v46 = vadd.f32 %v1976_v18, %v1277_v39  ;;  %v1942_v27 = vadd.f32 %v2854_v41, %v2849_v10  ;;  %v1979_v9 = vadd.f32 %v2847_v40, %v2843_v36  ;;  %v3007_v55 = vld [vmem:[#allocation5_spill] sm:$0xff] }
 0x165   : > { %v1399_v45 = vadd.f32 %v2010_v13, %v1334_v44  ;;  %v2051_v7 = vpop.f32.mrf.mxu1  ;;  %v1500_v17 = vmul.f32 %v2872_v54, %v1461_v37  ;;  %v1220_v44 = vadd.f32 %v1902_v16, %v1155_v3  ;;  %v1982_v36 = vadd.f32 %v2858_v14, %v3003_v49 }
 0x166   : > { %v2012_v5 = vpop.f32.mrf.mxu0  ;;  %v1347_v13 = vadd.f32 %v1979_v9, %v1282_v19 }
 0x167   : > { %v1464_v28 = vadd.f32 %v2050_v6, %v1399_v45  ;;  %v2013_v50 = vadd.f32 %v2012_v5, %v2011_v60  ;;  %v2052_v22 = vpop.f32.mrf.mxu1  ;;  %v1513_v24 = vsel %vm1506_vm0, %v1500_v17, 0.0  ;;  %v1285_v0 = vadd.f32 %v1942_v27, %v1220_v44  ;;  %v1489_v5 = vld [vmem:[%s2961_s3 + $0x30] sm:$0xff] }
 0x168   : > { %v2014_v43 = vpop.f32.mrf.mxu0  ;;  %1514 = vadd.xlane.f32.xlu1 %v1513_v24  ;;  %v2053_v30 = vadd.f32 %v2052_v22, %v2051_v7 }
 0x169   : > { %v1404_v11 = vadd.f32 %v2013_v50, %v1339_v26  ;;  %v2054_v33 = vpop.f32.mrf.mxu1  ;;  %v1501_v62 = vmul.f32 %v2872_v54, %v1464_v28  ;;  %v1350_v34 = vadd.f32 %v1982_v36, %v1285_v0  ;;  %v3004_v26 = vld [vmem:[#allocation4_spill] sm:$0xff]  ;;  %v1558_v28 = vpop.permute.xlu1 %1557 }
 0x16a   : > { %v2015_v2 = vpop.f32.mrf.mxu0 }
 0x16b   : > { %v1469_v29 = vadd.f32 %v2053_v30, %v1404_v11  ;;  %v2016_v42 = vadd.f32 %v2015_v2, %v2014_v43  ;;  %v2055_v25 = vpop.f32.mrf.mxu1  ;;  %v1516_v38 = vsel %vm1506_vm0, %v1501_v62, 0.0  ;;  %v3005_v43 = vld [vmem:[#allocation2_spill] sm:$0xff]  ;;  %v3006_v11 = vld [vmem:[#allocation3_spill] sm:$0xff] }
 0x16c   : > { %v2017_v1 = vpop.f32.mrf.mxu0  ;;  %1517 = vadd.xlane.f32.xlu1 %v1516_v38  ;;  %v2056_v47 = vadd.f32 %v2055_v25, %v2054_v33 }
 0x16d   : > { %v1407_v53 = vadd.f32 %v2016_v42, %v1342_v46  ;;  %v2057_v35 = vpop.f32.mrf.mxu1  ;;  %v1502_v37 = vmul.f32 %v2872_v54, %v1469_v29  ;;  %v1560_v50 = vpop.permute.xlu1 %1559  ;;  %v3008_v29 = vld [vmem:[#allocation6_spill] sm:$0xff] }
 0x16e   : > { %v2018_v59 = vpop.f32.mrf.mxu0 }
 0x16f   : > { %v1472_v41 = vadd.f32 %v2056_v47, %v1407_v53  ;;  %v2019_v10 = vadd.f32 %v2018_v59, %v2017_v1  ;;  %v2058_v4 = vpop.f32.mrf.mxu1  ;;  %v1519_v8 = vsel %vm1506_vm0, %v1502_v37, 0.0  ;;  %v3009_v47 = vld [vmem:[#allocation7_spill] sm:$0xff] }
 0x170   : > { %v2020_v15 = vpop.f32.mrf.mxu0  ;;  %1520 = vadd.xlane.f32.xlu0 %v1519_v8  ;;  %v2059_v32 = vadd.f32 %v2058_v4, %v2057_v35 }
 0x171   : > { %v1412_v40 = vadd.f32 %v2019_v10, %v1347_v13  ;;  %v2060_v21 = vpop.f32.mrf.mxu1  ;;  %v1503_v60 = vmul.f32 %v2872_v54, %v1472_v41  ;;  %v1562_v24 = vpop.permute.xlu1 %1561 }
 0x172   : > { %v2021_v31 = vpop.f32.mrf.mxu0 }
 0x173   : > { %v1477_v23 = vadd.f32 %v2059_v32, %v1412_v40  ;;  %v2022_v45 = vadd.f32 %v2021_v31, %v2020_v15  ;;  %v2061_v6 = vpop.f32.mrf.mxu1  ;;  %v1522_v7 = vsel %vm1506_vm0, %v1503_v60, 0.0 }
 0x174   : > { %1523 = vadd.xlane.f32.xlu1 %v1522_v7  ;;  %v2062_v20 = vadd.f32 %v2061_v6, %v2060_v21 }
 0x175   : > { %v1415_v17 = vadd.f32 %v2022_v45, %v1350_v34  ;;  %v1504_v48 = vmul.f32 %v2872_v54, %v1477_v23  ;;  %v1566_v58 = vpop.permute.xlu1 %1565 }
 0x177   : > { %v1480_v51 = vadd.f32 %v2062_v20, %v1415_v17  ;;  %v1525_v14 = vsel %vm1506_vm0, %v1504_v48, 0.0 }
 0x178   : > { %1526 = vadd.xlane.f32.xlu0 %v1525_v14 }
 0x179   : > { %v1505_v39 = vmul.f32 %v2872_v54, %v1480_v51  ;;  %v1556_v54 = vpop.permute.xlu0 %1555 }
 0x17b   : > { %v1528_v56 = vsel %vm1506_vm0, %v1505_v39, 0.0 }
 0x17c   : > { %1529 = vadd.xlane.f32.xlu1 %v1528_v56 }
 0x17d   : > { %v1564_v22 = vpop.permute.xlu0 %1563 }
 0x18d   : > { %1569 = vrot.lane.b32.xlu1 %v1490_v63, %s2085_s9 }
 0x18e   : > { %1567 = vrot.lane.b32.xlu0 %v1489_v5, %s2085_s9 }
 0x192   : > { %1609 = vrot.lane.b32.xlu0 %v3004_v26, %s2086_s27 }
 0x1e9   : > { %v1509_v52 = vpop.xlane.xlu0 %1508 }
 0x1ea   : > { %v1531_v3 = vadd.f32 %v1509_v52, %v3004_v26 }
 0x1ec   : > { %v1539_v16 = vmax.f32 %v1531_v3, 0.0 }
 0x1ed   : > { %v1512_v61 = vpop.xlane.xlu0 %1511 }
 0x1ee   : > { %v1532_v12 = vadd.f32 %v1512_v61, %v3005_v43  ;;  %v1579_v25 = vmul.f32 %v1556_v54, %v1539_v16 }
 0x1f0   : > { %v1540_v62 = vmax.f32 %v1532_v12, 0.0  ;;  %v1588_v37 = vsel %vm1587_vm1, %v1579_v25, 0.0 }
 0x1f1   : > { %v1515_v18 = vpop.xlane.xlu1 %1514 }
 0x1f2   : > { %v1533_v30 = vadd.f32 %v1515_v18, %v3006_v11  ;;  %v1580_v2 = vmul.f32 %v1558_v28, %v1540_v62 }
 0x1f4   : > { %v1541_v46 = vmax.f32 %v1533_v30, 0.0  ;;  %v1589_v44 = vsel %vm1587_vm1, %v1580_v2, 0.0 }
 0x1f5   : > { %v1518_v33 = vpop.xlane.xlu1 %1517  ;;  %v1590_v41 = vadd.f32 %v1589_v44, %v1588_v37 }
 0x1f6   : > { %v1534_v57 = vadd.f32 %v1518_v33, %v3007_v55  ;;  %v1581_v38 = vmul.f32 %v1560_v50, %v1541_v46 }
 0x1f8   : > { %v1542_v27 = vmax.f32 %v1534_v57, 0.0  ;;  %v1591_v13 = vsel %vm1587_vm1, %v1581_v38, 0.0 }
 0x1f9   : > { %v1521_v19 = vpop.xlane.xlu0 %1520  ;;  %v1592_v49 = vadd.f32 %v1591_v13, %v1590_v41 }
 0x1fa   : > { %v1535_v42 = vadd.f32 %v1521_v19, %v3008_v29  ;;  %v1582_v53 = vmul.f32 %v1562_v24, %v1542_v27 }
 0x1fc   : > { %v1543_v9 = vmax.f32 %v1535_v42, 0.0  ;;  %v1593_v4 = vsel %vm1587_vm1, %v1582_v53, 0.0 }
 0x1fd   : > { %v1524_v1 = vpop.xlane.xlu1 %1523  ;;  %v1594_v32 = vadd.f32 %v1593_v4, %v1592_v49 }
 0x1fe   : > { %v1536_v35 = vadd.f32 %v1524_v1, %v3009_v47  ;;  %v1583_v59 = vmul.f32 %v1564_v22, %v1543_v9 }
 0x200   : > { %v1544_v0 = vmax.f32 %v1536_v35, 0.0  ;;  %v1595_v36 = vsel %vm1587_vm1, %v1583_v59, 0.0 }
 0x201   : > { %v1527_v10 = vpop.xlane.xlu0 %1526  ;;  %v1596_v45 = vadd.f32 %v1595_v36, %v1594_v32 }
 0x202   : > { %v1584_v8 = vmul.f32 %v1566_v58, %v1544_v0  ;;  %v1537_v15 = vadd.f32 %v1527_v10, %v1489_v5 }
 0x204   : > { %v1545_v40 = vmax.f32 %v1537_v15, 0.0  ;;  %v1597_v31 = vsel %vm1587_vm1, %v1584_v8, 0.0 }
 0x205   : > { %v1530_v21 = vpop.xlane.xlu1 %1529  ;;  %v1568_v60 = vpop.permute.xlu0 %1567  ;;  %v1598_v17 = vadd.f32 %v1597_v31, %v1596_v45 }
 0x206   : > { %v1538_v34 = vadd.f32 %v1530_v21, %v1490_v63  ;;  %v1585_v23 = vmul.f32 %v1568_v60, %v1545_v40 }
 0x208   : > { %v1546_v6 = vmax.f32 %v1538_v34, 0.0  ;;  %v1599_v7 = vsel %vm1587_vm1, %v1585_v23, 0.0 }
 0x209   : > { %v1570_v20 = vpop.permute.xlu1 %1569  ;;  %v1600_v51 = vadd.f32 %v1599_v7, %v1598_v17  ;;  %v1610_v50 = vpop.permute.xlu0 %1609 }
 0x20a   : > { %v1586_v48 = vmul.f32 %v1570_v20, %v1546_v6 }
 0x20c   : > { %v1601_v14 = vsel %vm1587_vm1, %v1586_v48, 0.0 }
 0x20d   : > { %v1602_v39 = vadd.f32 %v1601_v14, %v1600_v51 }
 0x20f   : > { %v1603_v56 = vrot.slane %v1602_v39, 4 }
 0x211   : > { %v1604_v5 = vadd.f32 %v1603_v56, %v1602_v39 }
 0x213   : > { %v1605_v26 = vrot.slane %v1604_v5, 2 }
 0x215   : > { %v1606_v28 = vadd.f32 %v1605_v26, %v1604_v5 }
 0x217   : > { %v1607_v54 = vrot.slane %v1606_v28, 1 }
 0x219   : > { %v1608_v63 = vadd.f32 %v1607_v54, %v1606_v28 }
 0x21b   : > { %v1612_v22 = vadd.f32 %v1610_v50, %v1608_v63 }
 0x21d   : > { %v1613_v24 = vsub.f32 0.0, %v1612_v22 }
 0x21f   : > { %v1614_v52 = vmul.f32 1.442695, %v1613_v24 }
 0x221   : > { %2073 = vpow2.f32 %v1614_v52 }
 0x22e   : > { %v2074_v58 = vpop.eup %2073 }
 0x22f   : > { %v1616_v61 = vadd.f32 1.0, %v2074_v58 }
 0x231   : > { %2075 = vrcp.f32 %v1616_v61 }
 0x23e   : > { %v2076_v18 = vpop.eup %2075 }
 0x23f   : > { %1620 = vst.msk [vmem:[%s193_s5] sm:$0x1] %vm1619_vm2, %v2076_v18 }
 0x240 PF: > { %s14_s15 = sadd.s32 1, %s2083_s15  }
 0x241   : > { %p11_p4 = scmp.ge.s32.totalorder %s14_s15, 4  }
 0x243   :  { %13 = sbr.rel (!%p11_p4) target bundleno = 1 (0x1), region = 66 }

</bundles_post_ra>
